<compile_context>
chip_gen: v5e
topology: v5e:2x2
jax: 0.10.0
libtpu: 0.0.40
codegen_flags: <defaults>
</compile_context>

<pallas_src>
import math

import jax
import jax.numpy as jnp
from jax.experimental import pallas as pl
from jax.experimental.pallas import tpu as pltpu


# TODO(synk): nn.Dropout on the attention probabilities is not implemented
#             (the module default p=0.0 makes it an inference no-op).
# TODO(synk): only the query_multi_segment=False / key_multi_segment=False
#             branch of the PyTorch forward is implemented.


def _vmem_capacity_bytes():
    try:
        info = pltpu.get_tpu_info()
        return int(getattr(info, "vmem_capacity_bytes", 64 * 1024 * 1024))
    except Exception:
        return 64 * 1024 * 1024  # conservative (v7x-sized) fallback


def _choose_tile_n(B, N, T, D, ksize, nb_head, vmem_bytes):
    """Largest divisor of N whose per-step footprint fits a fraction of VMEM,
    while keeping the parallel grid >= 2 blocks (v7x megacore)."""
    budget = vmem_bytes // 4  # headroom for double-buffering + compiler slack

    def est_bytes(tn):
        row = T * D * 4
        io = 2 * 4 * tn * row                  # q, k, v, out double-buffered
        stack = 2 * tn * T * ksize * D * 4     # fused conv tap stacks
        proj = 6 * tn * row                    # Q, Kc, V + head-major copies
        attn = 3 * tn * nb_head * T * T * 4    # scores / exp / probs
        pad = tn * (T + ksize) * D * 4         # causal-pad scratch
        return io + stack + proj + attn + pad

    divisors = [d for d in range(1, N + 1) if N % d == 0]
    fitting = [d for d in divisors if est_bytes(d) <= budget]
    tile_n = fitting[-1] if fitting else 1
    if B * (N // tile_n) < 2:                  # keep >= 2 grid blocks
        smaller = [d for d in divisors if d < tile_n]
        if smaller:
            tile_n = smaller[-1]
    return tile_n


def _make_kernel(nb_head, d_k, ksize, tile_n, T, D):
    scale = 1.0 / math.sqrt(d_k)
    M = tile_n * T          # flattened matmul rows per grid step
    KD = ksize * D          # fused conv contraction width

    def kernel(mask_ref, q_ref, k_ref, v_ref,
               wq_ref, bq_ref, wk_ref, bk_ref,
               wv_ref, bv_ref, wo_ref, bo_ref,
               o_ref, pad_ref):
        f32 = jnp.float32

        # Zero the (K-1) causal left-pad rows of the shared scratch.
        if ksize > 1:
            pad_ref[:, :ksize - 1, :] = jnp.zeros((tile_n, ksize - 1, D), f32)

        def conv_proj(x, w_ref, b_ref):
            # Causal temporal conv == one matmul over the stacked shifted input:
            # out[t] = b + sum_j W_j @ x[t - (K-1) + j], x[<0] = 0.
            pad_ref[:, ksize - 1:, :] = x                        # rows [K-1, K-1+T)
            taps = [pad_ref[:, j:j + T, :] for j in range(ksize)]
            xs = jnp.concatenate(taps, axis=-1).reshape(M, KD)   # (M, K*D)
            w = w_ref[...].reshape(KD, D)                        # (K*D, D)
            return jnp.dot(xs, w, preferred_element_type=f32) + b_ref[...]

        Q = conv_proj(q_ref[0], wq_ref, bq_ref)                  # (M, D)
        Kc = conv_proj(k_ref[0], wk_ref, bk_ref)                 # (M, D)
        V = jnp.dot(v_ref[0].reshape(M, D), wv_ref[...],
                    preferred_element_type=f32) + bv_ref[...]    # (M, D)

        # Head-major stacking: (M, D) -> (nb_head*tile_n, T, d_k).  Heads become
        # the leading batch axis so scores / PV run as one batched dot_general.
        def to_heads(x2d):
            x3 = x2d.reshape(tile_n, T, D)
            return jnp.concatenate(
                [x3[:, :, h * d_k:(h + 1) * d_k] for h in range(nb_head)],
                axis=0)

        Qh = to_heads(Q)
        Kh = to_heads(Kc)
        Vh = to_heads(V)                                         # (H*tile_n, T, d_k)

        # Additive mask computed once (replaces per-head compare+select).
        mask_add = jnp.where(mask_ref[0] < 0.5, f32(-1.0e9), f32(0.0))   # (T, T)

        s = jnp.einsum('bqd,bkd->bqk', Qh, Kh,
                       preferred_element_type=f32) * scale + mask_add[None, :, :]
        m = jnp.max(s, axis=-1, keepdims=True)
        e = jnp.exp(s - m)
        p = e * pl.reciprocal(jnp.sum(e, axis=-1, keepdims=True), approx=True)
        ctx = jnp.einsum('bqk,bkd->bqd', p, Vh,
                         preferred_element_type=f32)             # (H*tile_n, T, d_k)

        # Output projection folded into a per-head accumulation: no lane concat,
        # per-head temporaries die immediately after their matmul.
        wo_h = wo_ref[...].reshape(nb_head, d_k, D)
        acc = jnp.zeros((M, D), f32)
        for h in range(nb_head):
            ch = ctx[h * tile_n:(h + 1) * tile_n].reshape(M, d_k)
            acc = acc + jnp.dot(ch, wo_h[h], preferred_element_type=f32)
        out = acc + bo_ref[...]

        o_ref[0] = out.reshape(tile_n, T, D).astype(o_ref.dtype)

    return kernel


def mha_temporal_context_qc_kc(query, key, value, mask, params,
                               *, nb_head, kernel_size, tile_n=None):
    """query/key/value: (B, N, T, d_model); mask: (B, T, T) of {0, 1}.
    Returns (B, N, T, d_model).

    Parameter layout (channels-last):
      wq_conv, wk_conv : (K, d_model, d_model)  == torch conv weight[o, c, 0, j] -> [j, c, o]
      wv, wo           : (d_model, d_model)     == torch linear weight.T
      bq, bk, bv, bo   : (1, d_model)
    """
    B, N, T, D = query.shape
    assert D % nb_head == 0
    assert T % 8 == 0, "kernel assumes T is a multiple of the 8-row sublane tile"
    d_k = D // nb_head
    wq_conv, bq, wk_conv, bk, wv, bv, wo, bo = params

    vmem_bytes = _vmem_capacity_bytes()
    if tile_n is None:
        tile_n = _choose_tile_n(B, N, T, D, kernel_size, nb_head, vmem_bytes)
    assert N % tile_n == 0

    kernel = _make_kernel(nb_head, d_k, kernel_size, tile_n, T, D)

    grid = (B, N // tile_n)
    qkv_spec = pl.BlockSpec((1, tile_n, T, D), lambda b, n: (b, n, 0, 0))
    mask_spec = pl.BlockSpec((1, T, T), lambda b, n: (b, 0, 0))
    conv_w_spec = pl.BlockSpec((kernel_size, D, D), lambda b, n: (0, 0, 0))
    lin_w_spec = pl.BlockSpec((D, D), lambda b, n: (0, 0))
    bias_spec = pl.BlockSpec((1, D), lambda b, n: (0, 0))

    vmem_limit = int(min(vmem_bytes * 3 // 4, 96 * 1024 * 1024))

    return pl.pallas_call(
        kernel,
        out_shape=jax.ShapeDtypeStruct((B, N, T, D), jnp.float32),
        grid_spec=pltpu.PrefetchScalarGridSpec(
            num_scalar_prefetch=0,
            grid=grid,
            in_specs=[mask_spec, qkv_spec, qkv_spec, qkv_spec,
                      conv_w_spec, bias_spec, conv_w_spec, bias_spec,
                      lin_w_spec, bias_spec, lin_w_spec, bias_spec],
            out_specs=qkv_spec,
            scratch_shapes=[
                pltpu.VMEM((tile_n, T + kernel_size - 1, D), jnp.float32)],
        ),
        compiler_params=pltpu.CompilerParams(
            dimension_semantics=("parallel", "parallel"),
            vmem_limit_bytes=vmem_limit),
    )(mask, query, key, value, wq_conv, bq, wk_conv, bk, wv, bv, wo, bo)


def reference_forward(query, key, value, mask, params, *, nb_head, kernel_size):
    """Pure-JAX reference mirroring the PyTorch forward (channels-last params)."""
    B, N, T, D = query.shape
    d_k = D // nb_head
    wq_conv, bq, wk_conv, bk, wv, bv, wo, bo = params

    def causal_conv(x, w, b):
        out = jnp.zeros_like(x)
        for j in range(kernel_size):
            shift = kernel_size - 1 - j
            xs = x if shift == 0 else jnp.pad(x[:, :, :T - shift, :],
                                              ((0, 0), (0, 0), (shift, 0), (0, 0)))
            out = out + jnp.einsum('bntd,de->bnte', xs, w[j])
        return out + b.reshape(1, 1, 1, D)

    def split_heads(x):
        return x.reshape(B, N, T, nb_head, d_k).transpose(0, 1, 3, 2, 4)

    Q = split_heads(causal_conv(query, wq_conv, bq))
    K_ = split_heads(causal_conv(key, wk_conv, bk))
    V = split_heads(jnp.einsum('bntd,de->bnte', value, wv) + bv.reshape(1, 1, 1, D))
    scores = jnp.einsum('bnhtd,bnhsd->bnhts', Q, K_) / math.sqrt(d_k)
    scores = jnp.where(mask[:, None, None, :, :] == 0, -1.0e9, scores)
    p = jax.nn.softmax(scores, axis=-1)
    x = jnp.einsum('bnhts,bnhsd->bnhtd', p, V)
    x = x.transpose(0, 1, 3, 2, 4).reshape(B, N, T, D)
    return jnp.einsum('bntd,de->bnte', x, wo) + bo.reshape(1, 1, 1, D)


if __name__ == "__main__":
    # small shapes consistent with the module: nb_head=4, d_model=32 -> d_k=8
    B, N, T, D = 2, 8, 8, 32
    nb_head, ksize = 4, 3

    keys = jax.random.split(jax.random.PRNGKey(0), 11)
    q = jax.random.normal(keys[0], (B, N, T, D), jnp.float32)
    k = jax.random.normal(keys[1], (B, N, T, D), jnp.float32)
    v = jax.random.normal(keys[2], (B, N, T, D), jnp.float32)
    # (batch, T, T) mask as in the PyTorch forward (causal lower-triangular here)
    mask = jnp.tile(jnp.tril(jnp.ones((T, T), jnp.float32))[None], (B, 1, 1))

    # deterministic synthetic parameters
    # conv weights stored as (K, d_in, d_out) == torch (d_out, d_in, 1, K) transposed
    # linear weights stored as (d_in, d_out) == torch weight.T ; biases as (1, D)
    s = 0.1
    wq_conv = s * jax.random.normal(keys[3], (ksize, D, D), jnp.float32)
    bq = s * jax.random.normal(keys[4], (1, D), jnp.float32)
    wk_conv = s * jax.random.normal(keys[5], (ksize, D, D), jnp.float32)
    bk = s * jax.random.normal(keys[6], (1, D), jnp.float32)
    wv = s * jax.random.normal(keys[7], (D, D), jnp.float32)
    bv = s * jax.random.normal(keys[8], (1, D), jnp.float32)
    wo = s * jax.random.normal(keys[9], (D, D), jnp.float32)
    bo = s * jax.random.normal(keys[10], (1, D), jnp.float32)
    params = (wq_conv, bq, wk_conv, bk, wv, bv, wo, bo)

    out = mha_temporal_context_qc_kc(q, k, v, mask, params,
                                     nb_head=nb_head, kernel_size=ksize)
    out = jax.block_until_ready(out)
    assert out.shape == (B, N, T, D)

    ref = reference_forward(q, k, v, mask, params, nb_head=nb_head, kernel_size=ksize)
    err = float(jnp.max(jnp.abs(out - ref)))
    if err > 5e-2:
        raise AssertionError(f"kernel mismatch vs reference, max abs err = {err}")

    print("KERNEL_OK")
</pallas_src>

<mosaic_0001>
module attributes {stable_mosaic.version = 11 : i64} {
  func.func @kernel(%arg0: i32, %arg1: i32, %arg2: memref<1x8x8xf32, #tpu.memory_space<vmem>>, %arg3: memref<1x8x8x32xf32, #tpu.memory_space<vmem>>, %arg4: memref<1x8x8x32xf32, #tpu.memory_space<vmem>>, %arg5: memref<1x8x8x32xf32, #tpu.memory_space<vmem>>, %arg6: memref<3x32x32xf32, #tpu.memory_space<vmem>>, %arg7: memref<1x32xf32, #tpu.memory_space<vmem>>, %arg8: memref<3x32x32xf32, #tpu.memory_space<vmem>>, %arg9: memref<1x32xf32, #tpu.memory_space<vmem>>, %arg10: memref<32x32xf32, #tpu.memory_space<vmem>>, %arg11: memref<1x32xf32, #tpu.memory_space<vmem>>, %arg12: memref<32x32xf32, #tpu.memory_space<vmem>>, %arg13: memref<1x32xf32, #tpu.memory_space<vmem>>, %arg14: memref<1x8x8x32xf32, #tpu.memory_space<vmem>>, %arg15: memref<8x10x32xf32, #tpu.memory_space<vmem>>) attributes {dimension_semantics = [#tpu.dimension_semantics<parallel>, #tpu.dimension_semantics<parallel>], iteration_bounds = array<i64: 2, 1>, scalar_prefetch = 0 : i64, scratch_operands = 1 : i64, tpu.core_type = #tpu.core_type<tc>, window_params = [{transform_indices = @transform_0, window_bounds = array<i64: 1, 8, 8>}, {transform_indices = @transform_1, window_bounds = array<i64: 1, 8, 8, 32>}, {transform_indices = @transform_2, window_bounds = array<i64: 1, 8, 8, 32>}, {transform_indices = @transform_3, window_bounds = array<i64: 1, 8, 8, 32>}, {pipeline_mode = #tpu.pipeline_mode<synchronous>, transform_indices = @transform_4, window_bounds = array<i64: 3, 32, 32>}, {pipeline_mode = #tpu.pipeline_mode<synchronous>, transform_indices = @transform_5, window_bounds = array<i64: 1, 32>}, {pipeline_mode = #tpu.pipeline_mode<synchronous>, transform_indices = @transform_6, window_bounds = array<i64: 3, 32, 32>}, {pipeline_mode = #tpu.pipeline_mode<synchronous>, transform_indices = @transform_7, window_bounds = array<i64: 1, 32>}, {pipeline_mode = #tpu.pipeline_mode<synchronous>, transform_indices = @transform_8, window_bounds = array<i64: 32, 32>}, {pipeline_mode = #tpu.pipeline_mode<synchronous>, transform_indices = @transform_9, window_bounds = array<i64: 1, 32>}, {pipeline_mode = #tpu.pipeline_mode<synchronous>, transform_indices = @transform_10, window_bounds = array<i64: 32, 32>}, {pipeline_mode = #tpu.pipeline_mode<synchronous>, transform_indices = @transform_11, window_bounds = array<i64: 1, 32>}, {transform_indices = @transform_12, window_bounds = array<i64: 1, 8, 8, 32>}]} {
    %cst = arith.constant 0.000000e+00 : f32
    %0 = vector.broadcast %cst : f32 to vector<8x2x32xf32>
    %c0 = arith.constant 0 : index
    %c0_0 = arith.constant 0 : index
    %c0_1 = arith.constant 0 : index
    %1 = vector.load %arg15[%c0, %c0_0, %c0_1] : memref<8x10x32xf32, #tpu.memory_space<vmem>>, vector<8x2x32xf32>
    tpu.vector_store %arg15[%c0, %c0_0, %c0_1], %0 {strides = array<i32>} : memref<8x10x32xf32, #tpu.memory_space<vmem>>, vector<8x2x32xf32>,
    %c0_2 = arith.constant 0 : index
    %c0_3 = arith.constant 0 : index
    %c0_4 = arith.constant 0 : index
    %c0_5 = arith.constant 0 : index
    %2 = vector.load %arg3[%c0_2, %c0_3, %c0_4, %c0_5] : memref<1x8x8x32xf32, #tpu.memory_space<vmem>>, vector<1x8x8x32xf32>
    %3 = vector.shape_cast %2 : vector<1x8x8x32xf32> to vector<8x8x32xf32>
    %c0_6 = arith.constant 0 : index
    %c2 = arith.constant 2 : index
    %c0_7 = arith.constant 0 : index
    %4 = vector.load %arg15[%c0_6, %c2, %c0_7] : memref<8x10x32xf32, #tpu.memory_space<vmem>>, vector<8x8x32xf32>
    tpu.vector_store %arg15[%c0_6, %c2, %c0_7], %3 {strides = array<i32>} : memref<8x10x32xf32, #tpu.memory_space<vmem>>, vector<8x8x32xf32>,
    %c0_8 = arith.constant 0 : index
    %c0_9 = arith.constant 0 : index
    %c0_10 = arith.constant 0 : index
    %5 = vector.load %arg15[%c0_8, %c0_9, %c0_10] : memref<8x10x32xf32, #tpu.memory_space<vmem>>, vector<8x8x32xf32>
    %c0_11 = arith.constant 0 : index
    %c1 = arith.constant 1 : index
    %c0_12 = arith.constant 0 : index
    %6 = vector.load %arg15[%c0_11, %c1, %c0_12] : memref<8x10x32xf32, #tpu.memory_space<vmem>>, vector<8x8x32xf32>
    %c0_13 = arith.constant 0 : index
    %c2_14 = arith.constant 2 : index
    %c0_15 = arith.constant 0 : index
    %7 = vector.load %arg15[%c0_13, %c2_14, %c0_15] : memref<8x10x32xf32, #tpu.memory_space<vmem>>, vector<8x8x32xf32>
    %8 = tpu.concatenate %5, %6, %7 in 2 : vector<8x8x32xf32>, vector<8x8x32xf32>, vector<8x8x32xf32> -> vector<8x8x96xf32>
    %9 = vector.shape_cast %8 : vector<8x8x96xf32> to vector<64x96xf32>
    %c0_16 = arith.constant 0 : index
    %c0_17 = arith.constant 0 : index
    %c0_18 = arith.constant 0 : index
    %10 = vector.load %arg6[%c0_16, %c0_17, %c0_18] : memref<3x32x32xf32, #tpu.memory_space<vmem>>, vector<3x32x32xf32>
    %11 = vector.shape_cast %10 : vector<3x32x32xf32> to vector<96x32xf32>
    %cst_19 = arith.constant dense<0.000000e+00> : vector<64x32xf32>
    %12 = tpu.matmul %9, %11, %cst_19 {dimension_numbers = #tpu.dot_dimension_numbers<[1], [0], [0], [1], [0, 0, 1, 1], [], []>} : vector<64x96xf32>, vector<96x32xf32>, vector<64x32xf32> -> vector<64x32xf32>
    %c0_20 = arith.constant 0 : index
    %c0_21 = arith.constant 0 : index
    %13 = vector.load %arg7[%c0_20, %c0_21] : memref<1x32xf32, #tpu.memory_space<vmem>>, vector<1x32xf32>
    %14 = vector.broadcast %13 : vector<1x32xf32> to vector<64x32xf32>
    %15 = arith.addf %12, %14 : vector<64x32xf32>
    %c0_22 = arith.constant 0 : index
    %c0_23 = arith.constant 0 : index
    %c0_24 = arith.constant 0 : index
    %c0_25 = arith.constant 0 : index
    %16 = vector.load %arg4[%c0_22, %c0_23, %c0_24, %c0_25] : memref<1x8x8x32xf32, #tpu.memory_space<vmem>>, vector<1x8x8x32xf32>
    %17 = vector.shape_cast %16 : vector<1x8x8x32xf32> to vector<8x8x32xf32>
    %c0_26 = arith.constant 0 : index
    %c2_27 = arith.constant 2 : index
    %c0_28 = arith.constant 0 : index
    %18 = vector.load %arg15[%c0_26, %c2_27, %c0_28] : memref<8x10x32xf32, #tpu.memory_space<vmem>>, vector<8x8x32xf32>
    tpu.vector_store %arg15[%c0_26, %c2_27, %c0_28], %17 {strides = array<i32>} : memref<8x10x32xf32, #tpu.memory_space<vmem>>, vector<8x8x32xf32>,
    %c0_29 = arith.constant 0 : index
    %c0_30 = arith.constant 0 : index
    %c0_31 = arith.constant 0 : index
    %19 = vector.load %arg15[%c0_29, %c0_30, %c0_31] : memref<8x10x32xf32, #tpu.memory_space<vmem>>, vector<8x8x32xf32>
    %c0_32 = arith.constant 0 : index
    %c1_33 = arith.constant 1 : index
    %c0_34 = arith.constant 0 : index
    %20 = vector.load %arg15[%c0_32, %c1_33, %c0_34] : memref<8x10x32xf32, #tpu.memory_space<vmem>>, vector<8x8x32xf32>
    %c0_35 = arith.constant 0 : index
    %c2_36 = arith.constant 2 : index
    %c0_37 = arith.constant 0 : index
    %21 = vector.load %arg15[%c0_35, %c2_36, %c0_37] : memref<8x10x32xf32, #tpu.memory_space<vmem>>, vector<8x8x32xf32>
    %22 = tpu.concatenate %19, %20, %21 in 2 : vector<8x8x32xf32>, vector<8x8x32xf32>, vector<8x8x32xf32> -> vector<8x8x96xf32>
    %23 = vector.shape_cast %22 : vector<8x8x96xf32> to vector<64x96xf32>
    %c0_38 = arith.constant 0 : index
    %c0_39 = arith.constant 0 : index
    %c0_40 = arith.constant 0 : index
    %24 = vector.load %arg8[%c0_38, %c0_39, %c0_40] : memref<3x32x32xf32, #tpu.memory_space<vmem>>, vector<3x32x32xf32>
    %25 = vector.shape_cast %24 : vector<3x32x32xf32> to vector<96x32xf32>
    %cst_41 = arith.constant dense<0.000000e+00> : vector<64x32xf32>
    %26 = tpu.matmul %23, %25, %cst_41 {dimension_numbers = #tpu.dot_dimension_numbers<[1], [0], [0], [1], [0, 0, 1, 1], [], []>} : vector<64x96xf32>, vector<96x32xf32>, vector<64x32xf32> -> vector<64x32xf32>
    %c0_42 = arith.constant 0 : index
    %c0_43 = arith.constant 0 : index
    %27 = vector.load %arg9[%c0_42, %c0_43] : memref<1x32xf32, #tpu.memory_space<vmem>>, vector<1x32xf32>
    %28 = vector.broadcast %27 : vector<1x32xf32> to vector<64x32xf32>
    %29 = arith.addf %26, %28 : vector<64x32xf32>
    %c0_44 = arith.constant 0 : index
    %c0_45 = arith.constant 0 : index
    %c0_46 = arith.constant 0 : index
    %c0_47 = arith.constant 0 : index
    %30 = vector.load %arg5[%c0_44, %c0_45, %c0_46, %c0_47] : memref<1x8x8x32xf32, #tpu.memory_space<vmem>>, vector<1x8x8x32xf32>
    %31 = vector.shape_cast %30 : vector<1x8x8x32xf32> to vector<8x8x32xf32>
    %32 = vector.shape_cast %31 : vector<8x8x32xf32> to vector<64x32xf32>
    %c0_48 = arith.constant 0 : index
    %c0_49 = arith.constant 0 : index
    %33 = vector.load %arg10[%c0_48, %c0_49] : memref<32x32xf32, #tpu.memory_space<vmem>>, vector<32x32xf32>
    %cst_50 = arith.constant dense<0.000000e+00> : vector<64x32xf32>
    %34 = tpu.matmul %32, %33, %cst_50 {dimension_numbers = #tpu.dot_dimension_numbers<[1], [0], [0], [1], [0, 0, 1, 1], [], []>} : vector<64x32xf32>, vector<32x32xf32>, vector<64x32xf32> -> vector<64x32xf32>
    %c0_51 = arith.constant 0 : index
    %c0_52 = arith.constant 0 : index
    %35 = vector.load %arg11[%c0_51, %c0_52] : memref<1x32xf32, #tpu.memory_space<vmem>>, vector<1x32xf32>
    %36 = vector.broadcast %35 : vector<1x32xf32> to vector<64x32xf32>
    %37 = arith.addf %34, %36 : vector<64x32xf32>
    %38 = vector.shape_cast %15 : vector<64x32xf32> to vector<8x8x32xf32>
    %39 = vector.extract_strided_slice %38 {offsets = [0, 0, 0], sizes = [8, 8, 8], strides = [1, 1, 1]} : vector<8x8x32xf32> to vector<8x8x8xf32>
    %40 = vector.extract_strided_slice %38 {offsets = [0, 0, 8], sizes = [8, 8, 8], strides = [1, 1, 1]} : vector<8x8x32xf32> to vector<8x8x8xf32>
    %41 = vector.extract_strided_slice %38 {offsets = [0, 0, 16], sizes = [8, 8, 8], strides = [1, 1, 1]} : vector<8x8x32xf32> to vector<8x8x8xf32>
    %42 = vector.extract_strided_slice %38 {offsets = [0, 0, 24], sizes = [8, 8, 8], strides = [1, 1, 1]} : vector<8x8x32xf32> to vector<8x8x8xf32>
    %43 = tpu.concatenate %39, %40, %41, %42 in 0 : vector<8x8x8xf32>, vector<8x8x8xf32>, vector<8x8x8xf32>, vector<8x8x8xf32> -> vector<32x8x8xf32>
    %44 = vector.shape_cast %29 : vector<64x32xf32> to vector<8x8x32xf32>
    %45 = vector.extract_strided_slice %44 {offsets = [0, 0, 0], sizes = [8, 8, 8], strides = [1, 1, 1]} : vector<8x8x32xf32> to vector<8x8x8xf32>
    %46 = vector.extract_strided_slice %44 {offsets = [0, 0, 8], sizes = [8, 8, 8], strides = [1, 1, 1]} : vector<8x8x32xf32> to vector<8x8x8xf32>
    %47 = vector.extract_strided_slice %44 {offsets = [0, 0, 16], sizes = [8, 8, 8], strides = [1, 1, 1]} : vector<8x8x32xf32> to vector<8x8x8xf32>
    %48 = vector.extract_strided_slice %44 {offsets = [0, 0, 24], sizes = [8, 8, 8], strides = [1, 1, 1]} : vector<8x8x32xf32> to vector<8x8x8xf32>
    %49 = tpu.concatenate %45, %46, %47, %48 in 0 : vector<8x8x8xf32>, vector<8x8x8xf32>, vector<8x8x8xf32>, vector<8x8x8xf32> -> vector<32x8x8xf32>
    %50 = vector.shape_cast %37 : vector<64x32xf32> to vector<8x8x32xf32>
    %51 = vector.extract_strided_slice %50 {offsets = [0, 0, 0], sizes = [8, 8, 8], strides = [1, 1, 1]} : vector<8x8x32xf32> to vector<8x8x8xf32>
    %52 = vector.extract_strided_slice %50 {offsets = [0, 0, 8], sizes = [8, 8, 8], strides = [1, 1, 1]} : vector<8x8x32xf32> to vector<8x8x8xf32>
    %53 = vector.extract_strided_slice %50 {offsets = [0, 0, 16], sizes = [8, 8, 8], strides = [1, 1, 1]} : vector<8x8x32xf32> to vector<8x8x8xf32>
    %54 = vector.extract_strided_slice %50 {offsets = [0, 0, 24], sizes = [8, 8, 8], strides = [1, 1, 1]} : vector<8x8x32xf32> to vector<8x8x8xf32>
    %55 = tpu.concatenate %51, %52, %53, %54 in 0 : vector<8x8x8xf32>, vector<8x8x8xf32>, vector<8x8x8xf32>, vector<8x8x8xf32> -> vector<32x8x8xf32>
    %c0_53 = arith.constant 0 : index
    %c0_54 = arith.constant 0 : index
    %c0_55 = arith.constant 0 : index
    %56 = vector.load %arg2[%c0_53, %c0_54, %c0_55] : memref<1x8x8xf32, #tpu.memory_space<vmem>>, vector<1x8x8xf32>
    %57 = vector.shape_cast %56 : vector<1x8x8xf32> to vector<8x8xf32>
    %cst_56 = arith.constant 5.000000e-01 : f32
    %58 = vector.broadcast %cst_56 : f32 to vector<8x8xf32>
    %59 = arith.cmpf olt, %57, %58 : vector<8x8xf32>
    %cst_57 = arith.constant -1.000000e+09 : f32
    %cst_58 = arith.constant 0.000000e+00 : f32
    %60 = vector.broadcast %cst_57 : f32 to vector<8x8xf32>
    %61 = vector.broadcast %cst_58 : f32 to vector<8x8xf32>
    %62 = arith.select %59, %60, %61 : vector<8x8xi1>, vector<8x8xf32>
    "tpu.trace_start"() <{level = 10 : i32, message = "bqd,bkd->bqk"}> : () -> ()
    %cst_59 = arith.constant dense<0.000000e+00> : vector<32x8x8xf32>
    %63 = tpu.matmul %43, %49, %cst_59 {dimension_numbers = #tpu.dot_dimension_numbers<[2], [2], [1], [1], [0, 0, 0, 1, 1, 1], [0], [0]>} : vector<32x8x8xf32>, vector<32x8x8xf32>, vector<32x8x8xf32> -> vector<32x8x8xf32>
    "tpu.trace_stop"() : () -> ()
    %cst_60 = arith.constant 0.353553385 : f32
    %64 = vector.broadcast %cst_60 : f32 to vector<32x8x8xf32>
    %65 = arith.mulf %63, %64 : vector<32x8x8xf32>
    %66 = vector.shape_cast %62 : vector<8x8xf32> to vector<1x8x8xf32>
    %67 = vector.broadcast %66 : vector<1x8x8xf32> to vector<32x8x8xf32>
    %68 = arith.addf %65, %67 : vector<32x8x8xf32>
    %cst_61 = arith.constant dense<0xFF800000> : vector<32x8xf32>
    %69 = vector.multi_reduction <maximumf>, %68, %cst_61 [2] : vector<32x8x8xf32> to vector<32x8xf32>
    %70 = vector.shape_cast %69 : vector<32x8xf32> to vector<32x8x1xf32>
    %71 = vector.broadcast %70 : vector<32x8x1xf32> to vector<32x8x8xf32>
    %72 = arith.subf %68, %71 : vector<32x8x8xf32>
    %73 = math.exp %72 : vector<32x8x8xf32>
    %cst_62 = arith.constant dense<0.000000e+00> : vector<32x8xf32>
    %74 = vector.multi_reduction <add>, %73, %cst_62 [2] : vector<32x8x8xf32> to vector<32x8xf32>
    %75 = vector.shape_cast %74 : vector<32x8xf32> to vector<32x8x1xf32>
    %76 = tpu.reciprocal %75 {approx = true} : vector<32x8x1xf32> -> vector<32x8x1xf32>
    %77 = vector.broadcast %76 : vector<32x8x1xf32> to vector<32x8x8xf32>
    %78 = arith.mulf %73, %77 : vector<32x8x8xf32>
    "tpu.trace_start"() <{level = 10 : i32, message = "bqk,bkd->bqd"}> : () -> ()
    %cst_63 = arith.constant dense<0.000000e+00> : vector<32x8x8xf32>
    %79 = tpu.matmul %78, %55, %cst_63 {dimension_numbers = #tpu.dot_dimension_numbers<[2], [1], [1], [2], [0, 0, 0, 1, 1, 2], [0], [0]>} : vector<32x8x8xf32>, vector<32x8x8xf32>, vector<32x8x8xf32> -> vector<32x8x8xf32>
    "tpu.trace_stop"() : () -> ()
    %c0_64 = arith.constant 0 : index
    %c0_65 = arith.constant 0 : index
    %80 = vector.load %arg12[%c0_64, %c0_65] : memref<32x32xf32, #tpu.memory_space<vmem>>, vector<32x32xf32>
    %81 = vector.shape_cast %80 : vector<32x32xf32> to vector<4x8x32xf32>
    %cst_66 = arith.constant 0.000000e+00 : f32
    %82 = vector.broadcast %cst_66 : f32 to vector<64x32xf32>
    %83 = vector.extract_strided_slice %79 {offsets = [0, 0, 0], sizes = [8, 8, 8], strides = [1, 1, 1]} : vector<32x8x8xf32> to vector<8x8x8xf32>
    %84 = vector.shape_cast %83 : vector<8x8x8xf32> to vector<64x8xf32>
    %85 = vector.extract_strided_slice %81 {offsets = [0, 0, 0], sizes = [1, 8, 32], strides = [1, 1, 1]} : vector<4x8x32xf32> to vector<1x8x32xf32>
    %86 = vector.shape_cast %85 : vector<1x8x32xf32> to vector<8x32xf32>
    %cst_67 = arith.constant dense<0.000000e+00> : vector<64x32xf32>
    %87 = tpu.matmul %84, %86, %cst_67 {dimension_numbers = #tpu.dot_dimension_numbers<[1], [0], [0], [1], [0, 0, 1, 1], [], []>} : vector<64x8xf32>, vector<8x32xf32>, vector<64x32xf32> -> vector<64x32xf32>
    %88 = arith.addf %82, %87 : vector<64x32xf32>
    %89 = vector.extract_strided_slice %79 {offsets = [8, 0, 0], sizes = [8, 8, 8], strides = [1, 1, 1]} : vector<32x8x8xf32> to vector<8x8x8xf32>
    %90 = vector.shape_cast %89 : vector<8x8x8xf32> to vector<64x8xf32>
    %91 = vector.extract_strided_slice %81 {offsets = [1, 0, 0], sizes = [1, 8, 32], strides = [1, 1, 1]} : vector<4x8x32xf32> to vector<1x8x32xf32>
    %92 = vector.shape_cast %91 : vector<1x8x32xf32> to vector<8x32xf32>
    %cst_68 = arith.constant dense<0.000000e+00> : vector<64x32xf32>
    %93 = tpu.matmul %90, %92, %cst_68 {dimension_numbers = #tpu.dot_dimension_numbers<[1], [0], [0], [1], [0, 0, 1, 1], [], []>} : vector<64x8xf32>, vector<8x32xf32>, vector<64x32xf32> -> vector<64x32xf32>
    %94 = arith.addf %88, %93 : vector<64x32xf32>
    %95 = vector.extract_strided_slice %79 {offsets = [16, 0, 0], sizes = [8, 8, 8], strides = [1, 1, 1]} : vector<32x8x8xf32> to vector<8x8x8xf32>
    %96 = vector.shape_cast %95 : vector<8x8x8xf32> to vector<64x8xf32>
    %97 = vector.extract_strided_slice %81 {offsets = [2, 0, 0], sizes = [1, 8, 32], strides = [1, 1, 1]} : vector<4x8x32xf32> to vector<1x8x32xf32>
    %98 = vector.shape_cast %97 : vector<1x8x32xf32> to vector<8x32xf32>
    %cst_69 = arith.constant dense<0.000000e+00> : vector<64x32xf32>
    %99 = tpu.matmul %96, %98, %cst_69 {dimension_numbers = #tpu.dot_dimension_numbers<[1], [0], [0], [1], [0, 0, 1, 1], [], []>} : vector<64x8xf32>, vector<8x32xf32>, vector<64x32xf32> -> vector<64x32xf32>
    %100 = arith.addf %94, %99 : vector<64x32xf32>
    %101 = vector.extract_strided_slice %79 {offsets = [24, 0, 0], sizes = [8, 8, 8], strides = [1, 1, 1]} : vector<32x8x8xf32> to vector<8x8x8xf32>
    %102 = vector.shape_cast %101 : vector<8x8x8xf32> to vector<64x8xf32>
    %103 = vector.extract_strided_slice %81 {offsets = [3, 0, 0], sizes = [1, 8, 32], strides = [1, 1, 1]} : vector<4x8x32xf32> to vector<1x8x32xf32>
    %104 = vector.shape_cast %103 : vector<1x8x32xf32> to vector<8x32xf32>
    %cst_70 = arith.constant dense<0.000000e+00> : vector<64x32xf32>
    %105 = tpu.matmul %102, %104, %cst_70 {dimension_numbers = #tpu.dot_dimension_numbers<[1], [0], [0], [1], [0, 0, 1, 1], [], []>} : vector<64x8xf32>, vector<8x32xf32>, vector<64x32xf32> -> vector<64x32xf32>
    %106 = arith.addf %100, %105 : vector<64x32xf32>
    %c0_71 = arith.constant 0 : index
    %c0_72 = arith.constant 0 : index
    %107 = vector.load %arg13[%c0_71, %c0_72] : memref<1x32xf32, #tpu.memory_space<vmem>>, vector<1x32xf32>
    %108 = vector.broadcast %107 : vector<1x32xf32> to vector<64x32xf32>
    %109 = arith.addf %106, %108 : vector<64x32xf32>
    %110 = vector.shape_cast %109 : vector<64x32xf32> to vector<8x8x32xf32>
    %c0_73 = arith.constant 0 : index
    %c0_74 = arith.constant 0 : index
    %c0_75 = arith.constant 0 : index
    %c0_76 = arith.constant 0 : index
    %111 = vector.load %arg14[%c0_73, %c0_74, %c0_75, %c0_76] : memref<1x8x8x32xf32, #tpu.memory_space<vmem>>, vector<1x8x8x32xf32>
    %112 = vector.shape_cast %111 : vector<1x8x8x32xf32> to vector<8x8x32xf32>
    %113 = vector.shape_cast %110 : vector<8x8x32xf32> to vector<1x8x8x32xf32>
    tpu.vector_store %arg14[%c0_73, %c0_74, %c0_75, %c0_76], %113 {strides = array<i32>} : memref<1x8x8x32xf32, #tpu.memory_space<vmem>>, vector<1x8x8x32xf32>,
    return
  }
  func.func @transform_0(%arg0: i32, %arg1: i32) -> (i32, i32, i32) {
    %c0_i32 = arith.constant 0 : i32
    %c0_i32_0 = arith.constant 0 : i32
    %c0_i32_1 = arith.constant 0 : i32
    return %arg0, %c0_i32, %c0_i32_0 : i32, i32, i32
  }
  func.func @transform_1(%arg0: i32, %arg1: i32) -> (i32, i32, i32, i32) {
    %c0_i32 = arith.constant 0 : i32
    %c0_i32_0 = arith.constant 0 : i32
    %c0_i32_1 = arith.constant 0 : i32
    return %arg0, %arg1, %c0_i32, %c0_i32_0 : i32, i32, i32, i32
  }
  func.func @transform_2(%arg0: i32, %arg1: i32) -> (i32, i32, i32, i32) {
    %c0_i32 = arith.constant 0 : i32
    %c0_i32_0 = arith.constant 0 : i32
    %c0_i32_1 = arith.constant 0 : i32
    return %arg0, %arg1, %c0_i32, %c0_i32_0 : i32, i32, i32, i32
  }
  func.func @transform_3(%arg0: i32, %arg1: i32) -> (i32, i32, i32, i32) {
    %c0_i32 = arith.constant 0 : i32
    %c0_i32_0 = arith.constant 0 : i32
    %c0_i32_1 = arith.constant 0 : i32
    return %arg0, %arg1, %c0_i32, %c0_i32_0 : i32, i32, i32, i32
  }
  func.func @transform_4(%arg0: i32, %arg1: i32) -> (i32, i32, i32) {
    %c0_i32 = arith.constant 0 : i32
    %c0_i32_0 = arith.constant 0 : i32
    %c0_i32_1 = arith.constant 0 : i32
    %c0_i32_2 = arith.constant 0 : i32
    return %c0_i32, %c0_i32_0, %c0_i32_1 : i32, i32, i32
  }
  func.func @transform_5(%arg0: i32, %arg1: i32) -> (i32, i32) {
    %c0_i32 = arith.constant 0 : i32
    %c0_i32_0 = arith.constant 0 : i32
    %c0_i32_1 = arith.constant 0 : i32
    return %c0_i32, %c0_i32_0 : i32, i32
  }
  func.func @transform_6(%arg0: i32, %arg1: i32) -> (i32, i32, i32) {
    %c0_i32 = arith.constant 0 : i32
    %c0_i32_0 = arith.constant 0 : i32
    %c0_i32_1 = arith.constant 0 : i32
    %c0_i32_2 = arith.constant 0 : i32
    return %c0_i32, %c0_i32_0, %c0_i32_1 : i32, i32, i32
  }
  func.func @transform_7(%arg0: i32, %arg1: i32) -> (i32, i32) {
    %c0_i32 = arith.constant 0 : i32
    %c0_i32_0 = arith.constant 0 : i32
    %c0_i32_1 = arith.constant 0 : i32
    return %c0_i32, %c0_i32_0 : i32, i32
  }
  func.func @transform_8(%arg0: i32, %arg1: i32) -> (i32, i32) {
    %c0_i32 = arith.constant 0 : i32
    %c0_i32_0 = arith.constant 0 : i32
    %c0_i32_1 = arith.constant 0 : i32
    return %c0_i32, %c0_i32_0 : i32, i32
  }
  func.func @transform_9(%arg0: i32, %arg1: i32) -> (i32, i32) {
    %c0_i32 = arith.constant 0 : i32
    %c0_i32_0 = arith.constant 0 : i32
    %c0_i32_1 = arith.constant 0 : i32
    return %c0_i32, %c0_i32_0 : i32, i32
  }
  func.func @transform_10(%arg0: i32, %arg1: i32) -> (i32, i32) {
    %c0_i32 = arith.constant 0 : i32
    %c0_i32_0 = arith.constant 0 : i32
    %c0_i32_1 = arith.constant 0 : i32
    return %c0_i32, %c0_i32_0 : i32, i32
  }
  func.func @transform_11(%arg0: i32, %arg1: i32) -> (i32, i32) {
    %c0_i32 = arith.constant 0 : i32
    %c0_i32_0 = arith.constant 0 : i32
    %c0_i32_1 = arith.constant 0 : i32
    return %c0_i32, %c0_i32_0 : i32, i32
  }
  func.func @transform_12(%arg0: i32, %arg1: i32) -> (i32, i32, i32, i32) {
    %c0_i32 = arith.constant 0 : i32
    %c0_i32_0 = arith.constant 0 : i32
    %c0_i32_1 = arith.constant 0 : i32
    return %arg0, %arg1, %c0_i32, %c0_i32_0 : i32, i32, i32, i32
  }
}

</mosaic_0001>

<bundles_post_ra>
// kernel: tpu_custom_call.1
= control target key start
LH: loop header
LB: loop body
LE: loop exit
PB: predicated region body
PF: predicated region fallthrough
CT: control target
= control target key end

     0   :  { %s5892_s0 = inlined_call_operand.hbm [shape: f32[2,8,8], index: 0, kind: input, shape index: {}]   ;;  %s5893_s1 = inlined_call_operand.hbm [shape: f32[2,8,8,32], index: 1, kind: input, shape index: {}]   ;;  %s5894_s2 = inlined_call_operand.hbm [shape: f32[2,8,8,32], index: 2, kind: input, shape index: {}]   ;;  %s5895_s3 = inlined_call_operand.hbm [shape: f32[2,8,8,32], index: 3, kind: input, shape index: {}]   ;;  %s5896_s4 = inlined_call_operand.hbm [shape: f32[3,32,32], index: 4, kind: input, shape index: {}]   ;;  %s5897_s5 = inlined_call_operand.vmem [shape: f32[1,32], index: 5, kind: input, shape index: {}]   ;;  %s5898_s6 = inlined_call_operand.hbm [shape: f32[3,32,32], index: 6, kind: input, shape index: {}]   ;;  %s5899_s7 = inlined_call_operand.vmem [shape: f32[1,32], index: 7, kind: input, shape index: {}]   ;;  %s5900_s8 = inlined_call_operand.hbm [shape: f32[32,32], index: 8, kind: input, shape index: {}]   ;;  %s5901_s9 = inlined_call_operand.vmem [shape: f32[1,32], index: 9, kind: input, shape index: {}]   ;;  %s5902_s10 = inlined_call_operand.hbm [shape: f32[32,32], index: 10, kind: input, shape index: {}]   ;;  %s5903_s11 = inlined_call_operand.vmem [shape: f32[1,32], index: 11, kind: input, shape index: {}]   ;;  %s5904_s12 = inlined_call_operand.hbm [shape: f32[2,8,8,32], index: 12, kind: output, shape index: {}]  }
   0x1   :  { %5918 = sst [smem:[#allocation33_spill]] %s5893_s1 }
   0x2   :  { %5919 = sst [smem:[#allocation34_spill]] %s5896_s4 }
   0x3   :  { %5920 = sst [smem:[#allocation35_spill]] %s5898_s6 }
   0x4   :  { %5921 = sst [smem:[#allocation36_spill]] %s5900_s8 }
   0x5   :  { %5922 = sst [smem:[#allocation37_spill]] %s5901_s9 }
   0x6   :  { %5923 = sst [smem:[#allocation38_spill]] %s5902_s10 }
   0x7   :  { %5924 = sst [smem:[#allocation39_spill]] %s5903_s11 }
   0x8   :  { %5925 = sst [smem:[#allocation40_spill]] %s5904_s12 }
   0x9   :  { %17 = vsyncpa [#allocation4], 0 }
   0xa   :  { %19 = vsyncpa [#allocation4 + $0x1], 0 }
   0xb   :  { %20 = vsyncpa [#allocation7], 0 }
   0xc   :  { %22 = vsyncpa [#allocation7 + $0x1], 0 }
   0xd   :  { %23 = vsyncpa [#allocation10], 0 }
   0xe   :  { %25 = vsyncpa [#allocation10 + $0x1], 0 }
   0xf   :  { %26 = vsyncpa [#allocation13], 0 }
  0x10   :  { %27 = vsyncpa [#allocation16], 0 }
  0x11   :  { %28 = vsyncpa [#allocation5], 0 }
  0x12   :  { %30 = vsyncpa [#allocation5 + $0x1], 0  ;;  %s4709_s21 = smov 0   ;;  %s4711_s22 = smov 0  }
  0x13   :  { %s4713_s23 = smov 0   ;;  %s4715_s24 = smov 0  }
  0x14   :  { %s4717_s25 = smov 0   ;;  %s4719_s26 = smov 0  }
  0x15 LB: > { %5926 = sst [smem:[#allocation25_spill]] %s4608_s21  ;;  %s4740_s27 = sadd.s32 4294967295, %s4628_s26   ;;  %s4628_s26 = sphi %s4719_s26, %s36_s26   ;;  %s4624_s25 = sphi %s4717_s25, %s5962_s25   ;;  %s4620_s24 = sphi %s4715_s24, %s5958_s24   ;;  %s4616_s23 = sphi %s4713_s23, %s5957_s23   ;;  %s4612_s22 = sphi %s4711_s22, %s5961_s22   ;;  %s4608_s21 = sphi %s4709_s21, %s5960_s21  }
  0x16   : > { %5927 = sst [smem:[#allocation26_spill]] %s4616_s23  ;;  %s3777_s28 = sadd.s32 4294967294, %s4628_s26  }
  0x17   : > { %5928 = sst [smem:[#allocation27_spill]] %s4620_s24  ;;  %p68_p0 = scmp.ne.s32.totalorder %s4612_s22, %s4608_s21 }
  0x18   : > { %5929 = sst [smem:[#allocation28_spill]] %s4624_s25  ;;  %p69_p1 = scmp.eq.s32.totalorder %s4740_s27, 0 }
  0x19   : > { %p346_p2 = scmp.eq.s32.totalorder %s4740_s27, 1  ;;  %p352_p3 = scmp.eq.s32.totalorder %s3777_s28, 1 }
  0x1a   : > { %p4749_p4 = por %p69_p1, %p68_p0  ;;  %p3778_p5 = scmp.ge.s32.totalorder %s4628_s26, 1 }
  0x1b   : > { %p4754_p6 = por %p352_p3, %p68_p0  ;;  %p359_p7 = scmp.lt.s32.totalorder %s4628_s26, 3 }
  0x1c   : > { %s5933_s4 = sld [smem:[#allocation34_spill]]  ;;  %s4630_s17 = smov [#allocation11]  }
  0x1d   : > { %s5931_s30 = scalar_select %p4754_p6, 1, 0 }
  0x1e   : > { %p4762_p8 = pnand %p3778_p5, %p359_p7  ;;  %s372_s18 = sshll.u32 %s4630_s17, 4  ;;  %s373_s18 = int_to_ptr.vmem [resolvable:$true] %s372_s18 }
  0x1f   : > { %5932 = sst [smem:[#allocation29_spill]] %s5931_s30  ;;  %s5906_s14 = smov 128  }
  0x20   : > { %p3992_p9 = pneg %p4762_p8  ;;  %s5936_s6 = sld [smem:[#allocation35_spill]] }
  0x21   : > { %s5908_s17 = smov 8   ;;  %s48_s20 = sadd.s32 1, %s4624_s25 }
  0x22   : > { %s370_s15 = sshll.u32 %s5933_s4, 4  ;;  %p4770_p10 = pnand %p3992_p9, %p69_p1  ;;  %s371_s15 = int_to_ptr.hbm [resolvable:$true] %s370_s15 }
  0x23   : > { %s4633_s4 = smov [#allocation12]   ;;  %s55_s28 = sadd.s32 1, %s4616_s23 }
  0x24   : > { %3995 = dma.hbm_to_vmem [thread:$0]  (!%p4770_p10), %s371_s15, 1536, %s373_s18, [#allocation10], %s5906_s14, %s5906_s14, %s5908_s17  }
  0x25   : > { %s389_s30 = sshll.u32 %s4633_s4, 4  ;;  %p50_p12 = scmp.ge.s32.totalorder %s48_s20, 2  ;;  %s390_s30 = int_to_ptr.vmem [resolvable:$true] %s389_s30 }
  0x26   : > { %s387_s13 = sshll.u32 %s5936_s6, 4  ;;  %p62_p13 = scmp.ne.s32.totalorder %s4616_s23, %s4612_s22  ;;  %s388_s13 = int_to_ptr.hbm [resolvable:$true] %s387_s13 }
  0x27   : > { %3998 = dma.hbm_to_vmem [thread:$0]  (!%p4770_p10), %s388_s13, 1536, %s390_s30, [#allocation13], %s5906_s14, %s5906_s14, %s5908_s17  }
  0x28   : > { %p63_p0 = scmp.eq.s32.totalorder %s4628_s26, 0  ;;  %p4026_p3 = scmp.lt.s32.totalorder %s4628_s26, 2 }
  0x29   : > { %s5964_s20 = smov (%p50_p12, %s48_s20), 0  ;;  %p4798_p7 = por %p346_p2, %p62_p13 }
  0x2a   : > { %5937 = sst [smem:[#allocation30_spill]] %s5964_s20  ;;  %p64_p5 = por %p63_p0, %p62_p13 }
  0x2b   : > { %s5938_s4 = scalar_select %p4798_p7, 1, 0 }
  0x2c   : > { %s52_s15 = ssub.s32 %s4624_s25, %s5964_s20  ;;  %s4805_s30 = sand.u32 1, %s4616_s23  }
  0x2d   : > { %5939 = sst [smem:[#allocation31_spill]] %s5938_s4  ;;  %p53_p9 = scmp.eq.s32.totalorder %s52_s15, 0 }
  0x2e   : > { %p4807_p11 = pnand %p4026_p3, %p64_p5  ;;  %s5916_s13 = sand.u32 1, %s4628_s26  }
  0x2f   : > { %s4813_s14 = sshll.u32 %s4805_s30, 6  ;;  %s4819_s6 = sshll.u32 %s4624_s25, 6 }
  0x30   : > { %s4816_s17 = scalar_select %p53_p9, %s4616_s23, %s55_s28  }
  0x31   : > { %s5942_s1 = sld [smem:[#allocation33_spill]]  ;;  %s463_s15 = scalar_lea.vmem [#allocation6], %s4813_s14 }
  0x32   : > { %5941 = sst [smem:[#allocation32_spill]] %s4816_s17  ;;  %s473_s12 = sshll.u32 %s463_s15, 4  ;;  %s474_s12 = int_to_ptr.vmem [resolvable:$true] %s473_s12 }
  0x33   : > { %s4828_s11 = scalar_lea.sflag [#allocation7], %s5916_s13  ;;  %s5943_s28 = smov 8  }
  0x34   : > { %s5944_s17 = smov 128   ;;  %s5945_s8 = sld [smem:[#allocation36_spill]] }
  0x35   : > { %s5946_s10 = sld [smem:[#allocation38_spill]]  ;;  %s441_s19 = scalar_lea.sflag [#allocation4], %s4805_s30 }
  0x36   : > { %s511_s21 = scalar_lea.vmem [#allocation9], %s4813_s14 }
  0x37   : > { %s470_s4 = scalar_lea.hbm %s5942_s1, %s4819_s6  ;;  %s3785_s1 = sshll.u32 %s4624_s25, 3 }
  0x38   : > { %s471_s24 = sshll.u32 %s470_s4, 4  ;;  %s4634_s4 = smov [#allocation14]   ;;  %s472_s24 = int_to_ptr.hbm [resolvable:$true] %s471_s24 }
  0x39   : > { %4011 = dma.hbm_to_vmem [thread:$0]  (!%p4807_p11), %s472_s24, 1024, %s474_s12, %s4828_s11, %s5944_s17, %s5944_s17, %s5943_s28  }
  0x3a   : > { %s404_s20 = sshll.u32 %s5945_s8, 4  ;;  %s406_s15 = sshll.u32 %s4634_s4, 4  ;;  %s405_s20 = int_to_ptr.hbm [resolvable:$true] %s404_s20  ;;  %s407_s15 = int_to_ptr.vmem [resolvable:$true] %s406_s15 }
  0x3b   : > { %s421_s13 = sshll.u32 %s5946_s10, 4  ;;  %s4635_s12 = smov [#allocation15]   ;;  %s422_s13 = int_to_ptr.hbm [resolvable:$true] %s421_s13 }
  0x3c   : > { %4001 = dma.hbm_to_vmem [thread:$0]  (!%p4770_p10), %s405_s20, 512, %s407_s15, [#allocation13], %s5944_s17, %s5944_s17, %s5943_s28  }
  0x3d   : > { %s423_s23 = sshll.u32 %s4635_s12, 4  ;;  %s3784_s24 = sshll.u32 %s4805_s30, 3  ;;  %s424_s23 = int_to_ptr.vmem [resolvable:$true] %s423_s23 }
  0x3e   : > { %4004 = dma.hbm_to_vmem [thread:$0]  (!%p4770_p10), %s422_s13, 512, %s424_s23, [#allocation16], %s5944_s17, %s5944_s17, %s5943_s28  }
  0x3f   : > { %s448_s20 = scalar_lea.hbm %s5892_s0, %s3785_s1  ;;  %s444_s4 = scalar_lea.vmem [#allocation3], %s3784_s24 }
  0x40   : > { %s452_s15 = sshll.u32 %s444_s4, 4  ;;  %s450_s8 = sshll.u32 %s448_s20, 4  ;;  %s453_s15 = int_to_ptr.vmem [resolvable:$true] %s452_s15  ;;  %s451_s8 = int_to_ptr.hbm [resolvable:$true] %s450_s8 }
  0x41   : > { %4008 = dma.hbm_to_vmem [thread:$0]  (!%p4807_p11), %s451_s8, 128, %s453_s15, %s441_s19  }
  0x42   : > { %s494_s23 = scalar_lea.hbm %s5894_s2, %s4819_s6  ;;  %s487_s10 = scalar_lea.vmem [#allocation8], %s4813_s14 }
  0x43   : > { %s497_s25 = sshll.u32 %s487_s10, 4  ;;  %s495_s9 = sshll.u32 %s494_s23, 4  ;;  %s498_s25 = int_to_ptr.vmem [resolvable:$true] %s497_s25  ;;  %s496_s9 = int_to_ptr.hbm [resolvable:$true] %s495_s9 }
  0x44   : > { %4014 = dma.hbm_to_vmem [thread:$0]  (!%p4807_p11), %s496_s9, 1024, %s498_s25, %s4828_s11, %s5944_s17, %s5944_s17, %s5943_s28  }
  0x45   : > { %s518_s30 = scalar_lea.hbm %s5895_s3, %s4819_s6  ;;  %s521_s8 = sshll.u32 %s511_s21, 4  ;;  %s522_s8 = int_to_ptr.vmem [resolvable:$true] %s521_s8 }
  0x46   : > { %s519_s20 = sshll.u32 %s518_s30, 4  ;;  %s5947_s4 = sand.u32 1, %s4628_s26   ;;  %s520_s20 = int_to_ptr.hbm [resolvable:$true] %s519_s20 }
  0x47   : > { %s508_s15 = scalar_lea.sflag [#allocation10], %s5947_s4  ;;  %533 = sbr.rel (%p4762_p8) target bundleno = 1420 (0x58c), region = 68 }
  0x48   : > { %4017 = dma.hbm_to_vmem [thread:$0]  (!%p4807_p11), %s520_s20, 1024, %s522_s8, %s508_s15, %s5944_s17, %s5944_s17, %s5943_s28  }
  0x49   : > { %s4886_s10 = sand.u32 (!%p4762_p8), 1, %s4612_s22  }
  0x4a   : > { %s3796_s6 = sshll.u32 (!%p4762_p8), %s4886_s10, 3  ;;  %s536_s11 = scalar_lea.sflag (!%p4762_p8), [#allocation4], %s4886_s10 }
  0x4b   : > { %s4890_s25 = scalar_lea.vmem (!%p4762_p8), [#allocation3], %s3796_s6 }
  0x4c   : > { %4579 = dma.done.wait (%p4749_p4), %s536_s11, 128  }
  0x4d   : > { %4581 = vsyncadd (%p4749_p4), %s536_s11, 4294967168  ;;  %s545_s16 = sand.u32 1, %s4740_s27   ;;  %s4898_s14 = sshll.u32 %s4886_s10, 6 }
  0x4e   : > { %s546_s17 = scalar_lea.sflag [#allocation7], %s545_s16  ;;  %s4901_s18 = scalar_lea.vmem [#allocation6], %s4898_s14 }
  0x4f   : > { %4583 = dma.done.wait (%p4749_p4), %s546_s17, 2048  }
  0x50   : > { %4585 = vsyncadd (%p4749_p4), %s546_s17, 4294965248  ;;  %s4908_s28 = scalar_lea.vmem [#allocation8], %s4898_s14  ;;  %s566_s19 = scalar_lea.sflag [#allocation10], %s545_s16 }
  0x51   : > { %s4911_s13 = scalar_lea.vmem [#allocation9], %s4898_s14 }
  0x52   : > { %4587 = dma.done.wait (%p4749_p4), %s566_s19, 1024  }
  0x53   : > { %4589 = vsyncadd (%p4749_p4), %s566_s19, 4294966272 }
  0x54   : > { %4591 = dma.done.wait (%p69_p1), [#allocation10], 1536  }
  0x55   : > { %4593 = vsyncadd (%p69_p1), [#allocation10], 4294965760 }
  0x56   : > { %4595 = dma.done.wait (%p69_p1), [#allocation13], 2048  }
  0x57   : > { %4597 = vsyncadd (%p69_p1), [#allocation13], 4294965248 }
  0x58   : > { %4599 = dma.done.wait (%p69_p1), [#allocation16], 512  }
  0x59   : > { %4601 = vsyncadd (%p69_p1), [#allocation16], 4294966784  ;;  %vm650_vm0 = vcmask 254976   ;;  %v4636_v0 = vmov 0.0   ;;  %vm667_vm1 = vcmask 261120   ;;  %v660_v1 = vld [vmem:[%s4901_s18 + $0x8] sm:$0xff] }
  0x5a   : > { %652 = vst.msk [vmem:[#allocation2 + $0x10] sm:$0x3] %vm650_vm0, %v4636_v0  ;;  %v659_v2 = vld [vmem:[%s4901_s18] sm:$0xff]  ;;  %v661_v3 = vld [vmem:[%s4901_s18 + $0x10] sm:$0xff]  ;;  %v662_v4 = vld [vmem:[%s4901_s18 + $0x18] sm:$0xff]  ;;  %s4637_s27 = smov 32  }
  0x5b   : > { %656 = vst.msk [vmem:[#allocation2 + $0x50] sm:$0x3] %vm650_vm0, %v4636_v0  ;;  %v663_v5 = vld [vmem:[%s4901_s18 + $0x20] sm:$0xff]  ;;  %v864_v6 = vld [vmem:[%s4908_s28 + $0x8] sm:$0xff]  ;;  %v865_v11 = vld [vmem:[%s4908_s28 + $0x10] sm:$0xff]  ;;  %s4638_s29 = smov 64  }
  0x5c   : > { %651 = vst.msk [vmem:[#allocation2] sm:$0x3] %vm650_vm0, %v4636_v0  ;;  %v863_v7 = vld [vmem:[%s4908_s28] sm:$0xff]  ;;  %v866_v12 = vld [vmem:[%s4908_s28 + $0x18] sm:$0xff]  ;;  %v664_v28 = vld [vmem:[%s4901_s18 + $0x28] sm:$0xff]  ;;  %vm772_vm2 = vcmask 523264  }
  0x5d   : > { %653 = vst.msk [vmem:[#allocation2 + $0x20] sm:$0x3] %vm650_vm0, %v4636_v0  ;;  %v867_v25 = vld [vmem:[%s4908_s28 + $0x20] sm:$0xff]  ;;  %v868_v34 = vld [vmem:[%s4908_s28 + $0x28] sm:$0xff]  ;;  %v665_v35 = vld [vmem:[%s4901_s18 + $0x30] sm:$0xff]  ;;  %vm797_vm3 = vcmask 785408  }
  0x5e   : > { %654 = vst.msk [vmem:[#allocation2 + $0x30] sm:$0x3] %vm650_vm0, %v4636_v0  ;;  %v869_v38 = vld [vmem:[%s4908_s28 + $0x30] sm:$0xff]  ;;  %v666_v39 = vld [vmem:[%s4901_s18 + $0x38] sm:$0xff]  ;;  %v790_v55 = vld [vmem:[#allocation11 + $0x48] sm:$0xff]  ;;  %s4639_s9 = smov 112  }
  0x5f   : > { %655 = vst.msk [vmem:[#allocation2 + $0x40] sm:$0x3] %vm650_vm0, %v4636_v0  ;;  %v870_v48 = vld [vmem:[%s4908_s28 + $0x38] sm:$0xff]  ;;  %v791_v53 = vld [vmem:[#allocation11 + $0x50] sm:$0xff]  ;;  %v992_v57 = vld [vmem:[#allocation12 + $0x48] sm:$0xff]  ;;  %s4640_s24 = smov 120  }
  0x60   : > { %657 = vst.msk [vmem:[#allocation2 + $0x60] sm:$0x3] %vm650_vm0, %v4636_v0  ;;  %v792_v52 = vld [vmem:[#allocation11 + $0x58] sm:$0xff]  ;;  %v993_v56 = vld [vmem:[#allocation12 + $0x50] sm:$0xff]  ;;  %v789_v58 = vld [vmem:[#allocation11 + $0x40] sm:$0xff]  ;;  %vm1340_vm4 = vcmask 64512  }
  0x61   : > { %669 = vst.msk [vmem:[#allocation2 + $0x12] sm:$0xff] %vm667_vm1, %v660_v1  ;;  %826 = vmatpush.msra.mxu0 %v792_v52  ;;  %v994_v54 = vld [vmem:[#allocation12 + $0x58] sm:$0xff]  ;;  %v787_v61 = vld [vmem:[#allocation11 + $0x30] sm:$0xff]  ;;  %v786_v62 = vld [vmem:[#allocation11 + $0x28] sm:$0xff]  ;;  %s4641_s21 = smov 104   ;;  %s5948_s4 = sld [smem:[#allocation37_spill]] }
  0x62   : > { %658 = vst.msk [vmem:[#allocation2 + $0x70] sm:$0x3] %vm650_vm0, %v4636_v0  ;;  %1027 = vmatpush.msra.mxu1 %v994_v54  ;;  %v788_v60 = vld [vmem:[#allocation11 + $0x38] sm:$0xff]  ;;  %s5949_s11 = sld [smem:[#allocation39_spill]]  ;;  %s3562_s12 = scalar_lea.sflag [#allocation5], %s4886_s10 }
  0x63   : > { %668 = vst.msk [vmem:[#allocation2 + $0x2] sm:$0xff] %vm667_vm1, %v659_v2  ;;  %827 = vmatpush.msra.mxu0 %v791_v53  ;;  %s5950_s16 = sld [smem:[#allocation27_spill]] }
  0x64   : > { %670 = vst.msk [vmem:[#allocation2 + $0x22] sm:$0xff] %vm667_vm1, %v661_v3  ;;  %1028 = vmatpush.msra.mxu1 %v993_v56  ;;  %v1075_v56 = vld [vmem:[#allocation14 + $0x18] sm:$0xff]  ;;  %s5951_s28 = sld [smem:[#allocation40_spill]] }
  0x65   : > { %671 = vst.msk [vmem:[#allocation2 + $0x32] sm:$0xff] %vm667_vm1, %v662_v4  ;;  %828 = vmatpush.msra.mxu0 %v790_v55  ;;  %v785_v4 = vld [vmem:[#allocation11 + $0x20] sm:$0xff]  ;;  %1116 = vmatpush.msra.mxu2 %v1075_v56 }
  0x66   : > { %672 = vst.msk [vmem:[#allocation2 + $0x42] sm:$0xff] %vm667_vm1, %v663_v5  ;;  %1029 = vmatpush.msra.mxu1 %v992_v57  ;;  %v991_v5 = vld [vmem:[#allocation12 + $0x40] sm:$0xff]  ;;  %v1074_v57 = vld [vmem:[#allocation14 + $0x10] sm:$0xff] }
  0x67   : > { %673 = vst.msk [vmem:[#allocation2 + $0x52] sm:$0xff] %vm667_vm1, %v664_v28  ;;  %829 = vmatpush.msra.mxu0 %v789_v58  ;;  %1117 = vmatpush.msra.mxu2 %v1074_v57 }
  0x68   : > { %v685_v8 = vld [vmem:[#allocation2 + $0x11] sm:$0xff]  ;;  %674 = vst.msk [vmem:[#allocation2 + $0x62] sm:$0xff] %vm667_vm1, %v665_v35  ;;  %1030 = vmatpush.msra.mxu1 %v991_v5 }
  0x69   : > { %v4949_v9 = vld [vmem:[#allocation2 + $0x10] sm:$0xff]  ;;  %710 = vrot.lane.b32.xlu0 %v685_v8, %s4637_s27  ;;  %675 = vst.msk [vmem:[#allocation2 + $0x72] sm:$0xff] %vm667_vm1, %v666_v39  ;;  %830 = vmatpush.msra.mxu0 %v788_v60  ;;  %v783_v8 = vld [vmem:[#allocation11 + $0x10] sm:$0xff] }
  0x6a   : > { %v693_v10 = vld [vmem:[#allocation2 + $0x12] sm:$0xff]  ;;  %v684_v13 = vld [vmem:[#allocation2 + $0x1] sm:$0xff]  ;;  %s4546_s30 = scalar_lea.hbm %s5951_s28, 128 }
  0x6b   : > { %872 = vst.msk [vmem:[#allocation2 + $0x12] sm:$0xff] %vm667_vm1, %v864_v6  ;;  %v692_v14 = vld [vmem:[#allocation2 + $0x2] sm:$0xff]  ;;  %708 = vrot.lane.b32.xlu1 %v684_v13, %s4637_s27  ;;  %831 = vmatpush.msra.mxu0 %v787_v61  ;;  %v781_v13 = vld [vmem:[#allocation11] sm:$0xff] }
  0x6c   : > { %v4955_v15 = vld [vmem:[#allocation2] sm:$0xff]  ;;  %v4963_v19 = vld [vmem:[#allocation2 + $0x30] sm:$0xff]  ;;  %v784_v6 = vld [vmem:[#allocation11 + $0x18] sm:$0xff] }
  0x6d   : > { %871 = vst.msk [vmem:[#allocation2 + $0x2] sm:$0xff] %vm667_vm1, %v863_v7  ;;  %v4959_v16 = vld [vmem:[#allocation2 + $0x20] sm:$0xff]  ;;  %v687_v20 = vld [vmem:[#allocation2 + $0x31] sm:$0xff]  ;;  %832 = vmatpush.msra.mxu0 %v786_v62  ;;  %v990_v7 = vld [vmem:[#allocation12 + $0x38] sm:$0xff] }
  0x6e   : > { %v686_v17 = vld [vmem:[#allocation2 + $0x21] sm:$0xff]  ;;  %v695_v21 = vld [vmem:[#allocation2 + $0x32] sm:$0xff]  ;;  %1031 = vmatpush.msra.mxu1 %v990_v7 }
  0x6f   : > { %v694_v18 = vld [vmem:[#allocation2 + $0x22] sm:$0xff]  ;;  %874 = vst.msk [vmem:[#allocation2 + $0x32] sm:$0xff] %vm667_vm1, %v866_v12  ;;  %v4975_v31 = vld [vmem:[#allocation2 + $0x50] sm:$0xff]  ;;  %833 = vmatpush.msra.mxu0 %v785_v4  ;;  %v988_v12 = vld [vmem:[#allocation12 + $0x28] sm:$0xff] }
  0x70   : > { %873 = vst.msk [vmem:[#allocation2 + $0x22] sm:$0xff] %vm667_vm1, %v865_v11  ;;  %744 = vrot.lane.b32.xlu2 %v694_v18, %s4638_s29  ;;  %v4966_v22 = vld [vmem:[#allocation2 + $0x40] sm:$0xff]  ;;  %v689_v32 = vld [vmem:[#allocation2 + $0x51] sm:$0xff] }
  0x71   : > { %v688_v23 = vld [vmem:[#allocation2 + $0x41] sm:$0xff]  ;;  %v697_v33 = vld [vmem:[#allocation2 + $0x52] sm:$0xff]  ;;  %834 = vmatpush.msra.mxu0 %v784_v6 }
  0x72   : > { %v696_v24 = vld [vmem:[#allocation2 + $0x42] sm:$0xff]  ;;  %v888_v26 = vld [vmem:[#allocation2 + $0x11] sm:$0xff]  ;;  %876 = vst.msk [vmem:[#allocation2 + $0x52] sm:$0xff] %vm667_vm1, %v868_v34 }
  0x73   : > { %875 = vst.msk [vmem:[#allocation2 + $0x42] sm:$0xff] %vm667_vm1, %v867_v25  ;;  %740 = vrot.lane.b32.xlu1 %v692_v14, %s4638_s29  ;;  %v896_v30 = vld [vmem:[#allocation2 + $0x12] sm:$0xff]  ;;  %v4989_v40 = vld [vmem:[#allocation2 + $0x60] sm:$0xff]  ;;  %835 = vmatpush.msra.mxu0 %v783_v8 }
  0x74   : > { %v887_v27 = vld [vmem:[#allocation2 + $0x1] sm:$0xff]  ;;  %v4995_v45 = vld [vmem:[#allocation2 + $0x70] sm:$0xff]  ;;  %v782_v11 = vld [vmem:[#allocation11 + $0x8] sm:$0xff] }
  0x75   : > { %911 = vrot.lane.b32.xlu0 %v887_v27, %s4637_s27  ;;  %v895_v29 = vld [vmem:[#allocation2 + $0x2] sm:$0xff]  ;;  %v691_v46 = vld [vmem:[#allocation2 + $0x71] sm:$0xff]  ;;  %836 = vmatpush.msra.mxu0 %v782_v11 }
  0x76   : > { %v690_v41 = vld [vmem:[#allocation2 + $0x61] sm:$0xff]  ;;  %v890_v43 = vld [vmem:[#allocation2 + $0x31] sm:$0xff] }
  0x77   : > { %v897_v36 = vld [vmem:[#allocation2 + $0x22] sm:$0xff]  ;;  %v898_v44 = vld [vmem:[#allocation2 + $0x32] sm:$0xff]  ;;  %837 = vmatpush.msra.mxu0 %v781_v13 }
  0x78   : > { %913 = vrot.lane.b32.xlu2 %v888_v26, %s4637_s27  ;;  %v889_v37 = vld [vmem:[#allocation2 + $0x21] sm:$0xff]  ;;  %v699_v47 = vld [vmem:[#allocation2 + $0x72] sm:$0xff] }
  0x79   : > { %v698_v42 = vld [vmem:[#allocation2 + $0x62] sm:$0xff]  ;;  %878 = vst.msk [vmem:[#allocation2 + $0x72] sm:$0xff] %vm667_vm1, %v870_v48  ;;  %v892_v51 = vld [vmem:[#allocation2 + $0x51] sm:$0xff] }
  0x7a   : > { %877 = vst.msk [vmem:[#allocation2 + $0x62] sm:$0xff] %vm667_vm1, %v869_v38  ;;  %v891_v49 = vld [vmem:[#allocation2 + $0x41] sm:$0xff]  ;;  %v900_v59 = vld [vmem:[#allocation2 + $0x52] sm:$0xff] }
  0x7b   : > { %742 = vrot.lane.b32.xlu1 %v693_v10, %s4638_s29  ;;  %v899_v50 = vld [vmem:[#allocation2 + $0x42] sm:$0xff]  ;;  %v987_v14 = vld [vmem:[#allocation12 + $0x20] sm:$0xff] }
  0x7c   : > { %v989_v10 = vld [vmem:[#allocation12 + $0x30] sm:$0xff]  ;;  %v880_v39 = vld [vmem:[#allocation2 + $0x10] sm:$0xff] }
  0x7d   : > { %943 = vrot.lane.b32.xlu0 %v895_v29, %s4638_s29  ;;  %1032 = vmatpush.msra.mxu1 %v989_v10  ;;  %v985_v18 = vld [vmem:[#allocation12 + $0x10] sm:$0xff]  ;;  %v882_v54 = vld [vmem:[#allocation2 + $0x30] sm:$0xff]  ;;  %v1065_v10 = vld [vmem:[%s4911_s13 + $0x8] sm:$0xff] }
  0x7e   : > { %v881_v48 = vld [vmem:[#allocation2 + $0x20] sm:$0xff] }
  0x7f   : > { %1033 = vmatpush.msra.mxu1 %v988_v12  ;;  %v884_v12 = vld [vmem:[#allocation2 + $0x50] sm:$0xff] }
  0x80   : > { %945 = vrot.lane.b32.xlu2 %v896_v30, %s4638_s29  ;;  %v894_v2 = vld [vmem:[#allocation2 + $0x71] sm:$0xff] }
  0x81   : > { %v893_v63 = vld [vmem:[#allocation2 + $0x61] sm:$0xff]  ;;  %v902_v3 = vld [vmem:[#allocation2 + $0x72] sm:$0xff]  ;;  %1034 = vmatpush.msra.mxu1 %v987_v14 }
  0x82   : > { %v901_v1 = vld [vmem:[#allocation2 + $0x62] sm:$0xff] }
  0x83   : > { %712 = vrot.lane.b32.xlu1 %v686_v17, %s4637_s27  ;;  %v986_v17 = vld [vmem:[#allocation12 + $0x18] sm:$0xff] }
  0x84   : > { %1035 = vmatpush.msra.mxu1 %v986_v17 }
  0x85   : > { %947 = vrot.lane.b32.xlu0 %v897_v36, %s4638_s29 }
  0x86   : > { %1036 = vmatpush.msra.mxu1 %v985_v18 }
  0x88   : > { %915 = vrot.lane.b32.xlu2 %v889_v37, %s4637_s27 }
  0x8b   : > { %949 = vrot.lane.b32.xlu1 %v898_v44, %s4638_s29 }
  0x8d   : > { %917 = vrot.lane.b32.xlu0 %v890_v43, %s4637_s27 }
  0x90   : > { %714 = vrot.lane.b32.xlu2 %v687_v20, %s4637_s27  ;;  %v984_v20 = vld [vmem:[#allocation12 + $0x8] sm:$0xff] }
  0x91   : > { %1037 = vmatpush.msra.mxu1 %v984_v20 }
  0x93   : > { %919 = vrot.lane.b32.xlu1 %v891_v49, %s4637_s27 }
  0x95   : > { %746 = vrot.lane.b32.xlu0 %v695_v21, %s4638_s29 }
  0x98   : > { %951 = vrot.lane.b32.xlu2 %v899_v50, %s4638_s29 }
  0x9b   : > { %748 = vrot.lane.b32.xlu1 %v696_v24, %s4638_s29 }
  0x9d   : > { %716 = vrot.lane.b32.xlu0 %v688_v23, %s4637_s27  ;;  %v983_v23 = vld [vmem:[#allocation12] sm:$0xff] }
  0x9e   : > { %1038 = vmatpush.msra.mxu1 %v983_v23 }
  0xa0   : > { %921 = vrot.lane.b32.xlu2 %v892_v51, %s4637_s27 }
  0xa3   : > { %718 = vrot.lane.b32.xlu1 %v689_v32, %s4637_s27 }
  0xa5   : > { %953 = vrot.lane.b32.xlu0 %v900_v59, %s4638_s29 }
  0xa8   : > { %750 = vrot.lane.b32.xlu2 %v697_v33, %s4638_s29  ;;  %v879_v33 = vld [vmem:[#allocation2] sm:$0xff] }
  0xab   : > { %955 = vrot.lane.b32.xlu1 %v901_v1, %s4638_s29 }
  0xad   : > { %923 = vrot.lane.b32.xlu0 %v893_v63, %s4637_s27  ;;  %v883_v63 = vld [vmem:[#allocation2 + $0x40] sm:$0xff] }
  0xb0   : > { %720 = vrot.lane.b32.xlu2 %v690_v41, %s4637_s27 }
  0xb3   : > { %925 = vrot.lane.b32.xlu1 %v894_v2, %s4637_s27  ;;  %v1072_v2 = vld [vmem:[#allocation14] sm:$0xff] }
  0xb5   : > { %752 = vrot.lane.b32.xlu0 %v698_v42, %s4638_s29 }
  0xb8   : > { %957 = vrot.lane.b32.xlu2 %v902_v3, %s4638_s29  ;;  %v1064_v3 = vld [vmem:[%s4911_s13] sm:$0xff] }
  0xbb   : > { %754 = vrot.lane.b32.xlu1 %v699_v47, %s4638_s29 }
  0xbd   : > { %722 = vrot.lane.b32.xlu0 %v691_v46, %s4637_s27 }
  0xca   : > { %v745_v21 = vpop.permute.xlu2 %744 }
  0xd2   : > { %v914_v24 = vpop.permute.xlu2 %913 }
  0xd3   : > { %v968_v42 = vsel %vm667_vm1, %v880_v39, %v914_v24 }
  0xda   : > { %v946_v27 = vpop.permute.xlu2 %945 }
  0xdb   : > { %v711_v25 = vpop.permute.xlu0 %710  ;;  %v976_v43 = vsel %vm772_vm2, %v968_v42, %v946_v27  ;;  %v1069_v42 = vld [vmem:[%s4911_s13 + $0x28] sm:$0xff] }
  0xdc   : > { %v765_v36 = vsel %vm667_vm1, %v4949_v9, %v711_v25  ;;  %v885_v25 = vld [vmem:[#allocation2 + $0x60] sm:$0xff] }
  0xdd   : > { %v709_v26 = vpop.permute.xlu1 %708 }
  0xde   : > { %v764_v28 = vsel %vm667_vm1, %v4955_v15, %v709_v26 }
  0xe2   : > { %v916_v34 = vpop.permute.xlu2 %915 }
  0xe3   : > { %v969_v50 = vsel %vm667_vm1, %v881_v48, %v916_v34  ;;  %v5100_v48 = vld [vmem:[%s5899_s7] ss:$0 sm:$0xff] }
  0xe5   : > { %v741_v29 = vpop.permute.xlu1 %740 }
  0xe6   : > { %v773_v32 = vsel %vm772_vm2, %v764_v28, %v741_v29  ;;  %v1067_v29 = vld [vmem:[%s4911_s13 + $0x18] sm:$0xff] }
  0xe7   : > { %v912_v30 = vpop.permute.xlu0 %911  ;;  %3805 = vmatmul.msk.f32.vlgmr.msra.gmra.mxu0 %vm797_vm3, %v773_v32  ;;  %v886_v32 = vld [vmem:[#allocation2 + $0x70] sm:$0xff] }
  0xe8   : > { %v967_v35 = vsel %vm667_vm1, %v879_v33, %v912_v30 }
  0xea   : > { %v715_v44 = vpop.permute.xlu2 %714 }
  0xeb   : > { %v767_v59 = vsel %vm667_vm1, %v4963_v19, %v715_v44  ;;  %v1070_v44 = vld [vmem:[%s4911_s13 + $0x30] sm:$0xff] }
  0xed   : > { %v743_v37 = vpop.permute.xlu1 %742 }
  0xee   : > { %v774_v41 = vsel %vm772_vm2, %v765_v36, %v743_v37 }
  0xef   : > { %v944_v38 = vpop.permute.xlu0 %943  ;;  %3806 = vmatmul.msk.f32.gmra.mxu0 %vm797_vm3, %v774_v41 }
  0xf0   : > { %v975_v15 = vsel %vm772_vm2, %v967_v35, %v944_v38  ;;  %v1068_v38 = vld [vmem:[%s4911_s13 + $0x20] sm:$0xff] }
  0xf1   : > { %3813 = vmatmul.msk.f32.vlgmr.msra.gmra.mxu1 %vm797_vm3, %v975_v15 }
  0xf2   : > { %v952_v55 = vpop.permute.xlu2 %951 }
  0xf5   : > { %v713_v46 = vpop.permute.xlu1 %712 }
  0xf6   : > { %v766_v9 = vsel %vm667_vm1, %v4959_v16, %v713_v46  ;;  %v1073_v16 = vld [vmem:[#allocation14 + $0x8] sm:$0xff]  ;;  %v1071_v46 = vld [vmem:[%s4911_s13 + $0x38] sm:$0xff] }
  0xf7   : > { %v948_v47 = vpop.permute.xlu0 %947  ;;  %v775_v49 = vsel %vm772_vm2, %v766_v9, %v745_v21  ;;  %1118 = vmatpush.msra.mxu2 %v1073_v16  ;;  %v1066_v21 = vld [vmem:[%s4911_s13 + $0x10] sm:$0xff] }
  0xf8   : > { %3807 = vmatmul.msk.f32.gmra.mxu0 %vm797_vm3, %v775_v49  ;;  %v977_v51 = vsel %vm772_vm2, %v969_v50, %v948_v47  ;;  %v5092_v47 = vld [vmem:[%s5897_s5] ss:$0 sm:$0xff] }
  0xf9   : > { %3814 = vmatmul.msk.f32.gmra.mxu1 %vm797_vm3, %v976_v43  ;;  %1119 = vmatpush.msra.mxu2 %v1072_v2 }
  0xfa   : > { %v922_v4 = vpop.permute.xlu2 %921  ;;  %3821 = vmatmul.msk.f32.vlgmr.msra.gmra.mxu2 %vm667_vm1, %v1064_v3 }
  0xfb   : > { %v972_v14 = vsel %vm667_vm1, %v884_v12, %v922_v4 }
  0xfd   : > { %v950_v53 = vpop.permute.xlu1 %949 }
  0xff   : > { %v918_v52 = vpop.permute.xlu0 %917 }
 0x100   : > { %v970_v58 = vsel %vm667_vm1, %v882_v54, %v918_v52 }
 0x101   : > { %3815 = vmatmul.msk.f32.gmra.mxu1 %vm797_vm3, %v977_v51  ;;  %v978_v60 = vsel %vm772_vm2, %v970_v58, %v950_v53 }
 0x102   : > { %3822 = vmatmul.msk.f32.gmra.mxu2 %vm667_vm1, %v1065_v10  ;;  %v751_v13 = vpop.permute.xlu2 %750 }
 0x105   : > { %v920_v62 = vpop.permute.xlu1 %919 }
 0x106   : > { %v971_v5 = vsel %vm667_vm1, %v883_v63, %v920_v62 }
 0x107   : > { %v747_v61 = vpop.permute.xlu0 %746  ;;  %v979_v19 = vsel %vm772_vm2, %v971_v5, %v952_v55 }
 0x108   : > { %v776_v1 = vsel %vm772_vm2, %v767_v59, %v747_v61 }
 0x109   : > { %3808 = vmatmul.msk.f32.gmra.mxu0 %vm797_vm3, %v776_v1  ;;  %3816 = vmatmul.msk.f32.gmra.mxu1 %vm797_vm3, %v978_v60 }
 0x10a   : > { %3823 = vmatmul.msk.f32.gmra.mxu2 %vm667_vm1, %v1066_v21  ;;  %v721_v24 = vpop.permute.xlu2 %720 }
 0x10b   : > { %v770_v30 = vsel %vm667_vm1, %v4989_v40, %v721_v24 }
 0x10d   : > { %v749_v7 = vpop.permute.xlu1 %748 }
 0x10f   : > { %v717_v6 = vpop.permute.xlu0 %716 }
 0x110   : > { %v768_v8 = vsel %vm667_vm1, %v4966_v22, %v717_v6 }
 0x111   : > { %3817 = vmatmul.msk.f32.gmra.mxu1 %vm797_vm3, %v979_v19  ;;  %v777_v11 = vsel %vm772_vm2, %v768_v8, %v749_v7 }
 0x112   : > { %3809 = vmatmul.msk.f32.gmra.mxu0 %vm797_vm3, %v777_v11  ;;  %3824 = vmatmul.msk.f32.gmra.mxu2 %vm667_vm1, %v1067_v29  ;;  %v958_v33 = vpop.permute.xlu2 %957 }
 0x115   : > { %v719_v18 = vpop.permute.xlu1 %718 }
 0x116   : > { %v769_v20 = vsel %vm667_vm1, %v4975_v31, %v719_v18 }
 0x117   : > { %v954_v17 = vpop.permute.xlu0 %953  ;;  %v778_v23 = vsel %vm772_vm2, %v769_v20, %v751_v13 }
 0x118   : > { %v980_v22 = vsel %vm772_vm2, %v972_v14, %v954_v17 }
 0x119   : > { %3818 = vmatmul.msk.f32.gmra.mxu1 %vm797_vm3, %v980_v22 }
 0x11a   : > { %3810 = vmatmul.msk.f32.gmra.mxu0 %vm797_vm3, %v778_v23  ;;  %3825 = vmatmul.msk.f32.gmra.mxu2 %vm667_vm1, %v1068_v38 }
 0x11d   : > { %v956_v27 = vpop.permute.xlu1 %955 }
 0x11f   : > { %v924_v26 = vpop.permute.xlu0 %923 }
 0x120   : > { %v973_v28 = vsel %vm667_vm1, %v885_v25, %v924_v26 }
 0x121   : > { %v981_v31 = vsel %vm772_vm2, %v973_v28, %v956_v27  ;;  %v4156_v28 = vld [vmem:[%s5948_s4] ss:$0 sm:$0xff] }
 0x122   : > { %3819 = vmatmul.msk.f32.gmra.mxu1 %vm797_vm3, %v981_v31  ;;  %3826 = vmatmul.msk.f32.gmra.mxu2 %vm667_vm1, %v1069_v42 }
 0x125   : > { %v926_v35 = vpop.permute.xlu1 %925 }
 0x126   : > { %v974_v37 = vsel %vm667_vm1, %v886_v32, %v926_v35 }
 0x127   : > { %v753_v34 = vpop.permute.xlu0 %752  ;;  %v982_v39 = vsel %vm772_vm2, %v974_v37, %v958_v33 }
 0x128   : > { %v779_v36 = vsel %vm772_vm2, %v770_v30, %v753_v34 }
 0x129   : > { %3811 = vmatmul.msk.f32.gmra.mxu0 %vm797_vm3, %v779_v36 }
 0x12a   : > { %3820 = vmatmul.msk.f32.gmra.mxu1 %vm797_vm3, %v982_v39  ;;  %3827 = vmatmul.msk.f32.gmra.mxu2 %vm667_vm1, %v1070_v44 }
 0x12d   : > { %v755_v41 = vpop.permute.xlu1 %754 }
 0x12f   : > { %v723_v40 = vpop.permute.xlu0 %722 }
 0x130   : > { %v771_v15 = vsel %vm667_vm1, %v4995_v45, %v723_v40 }
 0x131   : > { %v780_v43 = vsel %vm772_vm2, %v771_v15, %v755_v41 }
 0x132   : > { %3812 = vmatmul.msk.f32.gmra.mxu0 %vm797_vm3, %v780_v43  ;;  %3828 = vmatmul.msk.f32.gmra.mxu2 %vm667_vm1, %v1071_v46 }
 0x164   : > { %v839_v9 = vpop.f32.mrf.mxu0 }
 0x165   : > { %v840_v45 = vadd.f32 %v5092_v47, %v839_v9 }
 0x167   : > { %1169 = vrot.lane.b32.xlu2 %v840_v45, %s4639_s9  ;;  %1153 = vrot.lane.b32.xlu0 %v840_v45, %s4640_s24 }
 0x16c   : > { %v842_v49 = vpop.f32.mrf.mxu0 }
 0x16d   : > { %v843_v51 = vadd.f32 %v5092_v47, %v842_v49 }
 0x16e   : > { %v1040_v50 = vpop.f32.mrf.mxu1 }
 0x16f   : > { %v1041_v52 = vadd.f32 %v5100_v48, %v1040_v50  ;;  %1155 = vrot.lane.b32.xlu1 %v843_v51, %s4640_s24  ;;  %1185 = vrot.lane.b32.xlu0 %v840_v45, %s4641_s21 }
 0x171   : > { %3829 = vmatpush.xpose.msk.msra.mxu3 %vm1340_vm4, %v1041_v52  ;;  %1209 = vrot.lane.b32.xlu2 %v1041_v52, %s4640_s24 }
 0x174   : > { %3830 = vmatmul.msk.f32.vlgmr.msra.gmra.mxu3 %vm1340_vm4, %v840_v45 }
 0x175   : > { %v845_v55 = vpop.f32.mrf.mxu0 }
 0x176   : > { %v1043_v53 = vpop.f32.mrf.mxu1  ;;  %v846_v56 = vadd.f32 %v5092_v47, %v845_v55 }
 0x177   : > { %v1044_v54 = vadd.f32 %v5100_v48, %v1043_v53  ;;  %1241 = vrot.lane.b32.xlu1 %v1041_v52, %s4641_s21  ;;  %1225 = vrot.lane.b32.xlu0 %v1041_v52, %s4639_s9 }
 0x179   : > { %3831 = vmatpush.xpose.msk.msrb.mxu3 %vm1340_vm4, %v1044_v54  ;;  %1157 = vrot.lane.b32.xlu2 %v846_v56, %s4640_s24 }
 0x17c   : > { %3832 = vmatmul.msk.f32.vlgmr.msrb.gmra.mxu3 %vm1340_vm4, %v843_v51 }
 0x17d   : > { %v5140_v6 = vpop.f32.mrf.mxu2 }
 0x17e   : > { %v1046_v57 = vpop.f32.mrf.mxu1  ;;  %v5206_v37 = vadd.f32 %v4156_v28, %v5140_v6 }
 0x17f   : > { %v1047_v16 = vadd.f32 %v5100_v48, %v1046_v57  ;;  %1171 = vrot.lane.b32.xlu1 %v843_v51, %s4639_s9  ;;  %1173 = vrot.lane.b32.xlu0 %v846_v56, %s4639_s9 }
 0x181   : > { %3833 = vmatpush.xpose.msk.msra.mxu3 %vm1340_vm4, %v1047_v16  ;;  %1211 = vrot.lane.b32.xlu2 %v1044_v54, %s4640_s24 }
 0x184   : > { %3834 = vmatmul.msk.f32.vlgmr.msra.gmra.mxu3 %vm1340_vm4, %v846_v56 }
 0x185   : > { %v1124_v10 = vpop.f32.mrf.mxu2 }
 0x186   : > { %v848_v58 = vpop.f32.mrf.mxu0  ;;  %v1049_v59 = vpop.f32.mrf.mxu1  ;;  %v5191_v32 = vadd.f32 %v4156_v28, %v1124_v10 }
 0x187   : > { %v849_v60 = vadd.f32 %v5092_v47, %v848_v58  ;;  %v1050_v61 = vadd.f32 %v5100_v48, %v1049_v59  ;;  %1187 = vrot.lane.b32.xlu1 %v843_v51, %s4641_s21 }
 0x189   : > { %3835 = vmatpush.xpose.msk.msrb.mxu3 %vm1340_vm4, %v1050_v61  ;;  %1175 = vrot.lane.b32.xlu0 %v849_v60, %s4639_s9 }
 0x18a   : > { %1227 = vrot.lane.b32.xlu2 %v1044_v54, %s4639_s9 }
 0x18c   : > { %3836 = vmatmul.msk.f32.vlgmr.msrb.gmra.mxu3 %vm1340_vm4, %v849_v60 }
 0x18d   : > { %v1127_v17 = vpop.f32.mrf.mxu2 }
 0x18e   : > { %v1052_v62 = vpop.f32.mrf.mxu1  ;;  %v5187_v31 = vadd.f32 %v4156_v28, %v1127_v17 }
 0x18f   : > { %v1053_v63 = vadd.f32 %v5100_v48, %v1052_v62  ;;  %v851_v1 = vpop.f32.mrf.mxu0  ;;  %1213 = vrot.lane.b32.xlu1 %v1047_v16, %s4640_s24  ;;  %v1337_v62 = vld [vmem:[%s4890_s25] sm:$0xff]  ;;  %s5828_s25 = scalar_lea.vmem [#allocation17], %s4898_s14  ;;  %s3965_s14 = sshll.u32 %s5950_s16, 6 }
 0x190   : > { %v852_v2 = vadd.f32 %v5092_v47, %v851_v1  ;;  %v5195_v34 = vpack.i.bf16 %v5187_v31, %v5191_v32  ;;  %vm1338_vm5 = vcmp.lt.f32.partialorder %v1337_v62, 0.5  ;;  %s3575_s19 = scalar_lea.hbm %s5951_s28, %s3965_s14  ;;  %s3576_s27 = sshll.u32 %s5828_s25, 4  ;;  %s3577_s27 = int_to_ptr.vmem [resolvable:$true] %s3576_s27 }
 0x191   : > { %3837 = vmatpush.xpose.msk.msra.mxu3 %vm1340_vm4, %v1053_v63  ;;  %1191 = vrot.lane.b32.xlu0 %v849_v60, %s4641_s21  ;;  %s3578_s29 = sshll.u32 %s3575_s19, 4  ;;  %s3579_s29 = int_to_ptr.hbm [resolvable:$true] %s3578_s29 }
 0x192   : > { %1243 = vrot.lane.b32.xlu2 %v1044_v54, %s4641_s21  ;;  %s4540_s23 = sshra.s32 %s3579_s29, 4  ;;  %s4541_s23 = int_to_ptr.hbm [resolvable:$true] %s4540_s23 }
 0x193   : > { %p4547_p8 = scmp.lt.s32.totalorder %s4541_s23, %s5951_s28 }
 0x194   : > { %3838 = vmatmul.msk.f32.vlgmr.msra.gmra.mxu3 %vm1340_vm4, %v852_v2 }
 0x195   : > { %v1130_v22 = vpop.f32.mrf.mxu2 }
 0x196   : > { %v1055_v3 = vpop.f32.mrf.mxu1  ;;  %v5231_v9 = vadd.f32 %v4156_v28, %v1130_v22 }
 0x197   : > { %v1056_v4 = vadd.f32 %v5100_v48, %v1055_v3  ;;  %v854_v5 = vpop.f32.mrf.mxu0  ;;  %1229 = vrot.lane.b32.xlu1 %v1047_v16, %s4639_s9 }
 0x198   : > { %v855_v19 = vadd.f32 %v5092_v47, %v854_v5 }
 0x199   : > { %3839 = vmatpush.xpose.msk.msrb.mxu3 %vm1340_vm4, %v1056_v4  ;;  %1215 = vrot.lane.b32.xlu0 %v1050_v61, %s4640_s24 }
 0x19a   : > { %1189 = vrot.lane.b32.xlu2 %v846_v56, %s4641_s21 }
 0x19c   : > { %3840 = vmatmul.msk.f32.vlgmr.msrb.gmra.mxu3 %vm1340_vm4, %v855_v19 }
 0x19d   : > { %v1133_v21 = vpop.f32.mrf.mxu2 }
 0x19e   : > { %v5208_v38 = vadd.f32 %v4156_v28, %v1133_v21 }
 0x19f   : > { %v1058_v7 = vpop.f32.mrf.mxu1  ;;  %1245 = vrot.lane.b32.xlu1 %v1047_v16, %s4641_s21 }
 0x1a0   : > { %v1059_v8 = vadd.f32 %v5100_v48, %v1058_v7  ;;  %v4094_v42 = vpack.i.bf16 %v5208_v38, %v5206_v37 }
 0x1a1   : > { %1177 = vrot.lane.b32.xlu0 %v852_v2, %s4639_s9 }
 0x1a2   : > { %1159 = vrot.lane.b32.xlu2 %v849_v60, %s4640_s24  ;;  %3841 = vmatpush.xpose.msk.msra.mxu3 %vm1340_vm4, %v1059_v8 }
 0x1a5   : > { %v1136_v24 = vpop.f32.mrf.mxu2 }
 0x1a6   : > { %v857_v11 = vpop.f32.mrf.mxu0  ;;  %v5225_v43 = vadd.f32 %v4156_v28, %v1136_v24 }
 0x1a7   : > { %v858_v12 = vadd.f32 %v5092_v47, %v857_v11  ;;  %v1061_v13 = vpop.f32.mrf.mxu1  ;;  %1161 = vrot.lane.b32.xlu1 %v852_v2, %s4640_s24 }
 0x1a8   : > { %v5152_v14 = vadd.f32 %v5100_v48, %v1061_v13  ;;  %v5235_v45 = vpack.i.bf16 %v5231_v9, %v5225_v43 }
 0x1a9   : > { %3842 = vmatmul.msk.f32.vlgmr.msra.gmra.mxu3 %vm1340_vm4, %v858_v12  ;;  %1217 = vrot.lane.b32.xlu0 %v1053_v63, %s4640_s24 }
 0x1aa   : > { %1231 = vrot.lane.b32.xlu2 %v1050_v61, %s4639_s9  ;;  %3843 = vmatpush.xpose.msk.msrb.mxu3 %vm1340_vm4, %v5152_v14 }
 0x1ad   : > { %v1139_v27 = vpop.f32.mrf.mxu2 }
 0x1ae   : > { %v5198_v35 = vadd.f32 %v4156_v28, %v1139_v27 }
 0x1af   : > { %v860_v18 = vpop.f32.mrf.mxu0  ;;  %1193 = vrot.lane.b32.xlu1 %v852_v2, %s4641_s21  ;;  %v5267_v2 = vsel %vm1338_vm5, -1e+09, %v4636_v0 }
 0x1b0   : > { %v861_v20 = vadd.f32 %v5092_v47, %v860_v18 }
 0x1b1   : > { %1249 = vrot.lane.b32.xlu0 %v1053_v63, %s4641_s21 }
 0x1b2   : > { %1247 = vrot.lane.b32.xlu2 %v1050_v61, %s4641_s21  ;;  %3844 = vmatmul.msk.f32.vlgmr.msrb.gmra.mxu3 %vm1340_vm4, %v861_v20 }
 0x1b5   : > { %v1142_v33 = vpop.f32.mrf.mxu2 }
 0x1b6   : > { %v5203_v36 = vadd.f32 %v4156_v28, %v1142_v33 }
 0x1b7   : > { %1233 = vrot.lane.b32.xlu1 %v1053_v63, %s4639_s9 }
 0x1b8   : > { %v5217_v15 = vpack.i.bf16 %v5203_v36, %v5198_v35 }
 0x1b9   : > { %1195 = vrot.lane.b32.xlu0 %v855_v19, %s4641_s21 }
 0x1ba   : > { %1163 = vrot.lane.b32.xlu2 %v855_v19, %s4640_s24 }
 0x1bf   : > { %1179 = vrot.lane.b32.xlu1 %v855_v19, %s4639_s9 }
 0x1c1   : > { %1165 = vrot.lane.b32.xlu0 %v858_v12, %s4640_s24  ;;  %v5171_v23 = vpop.permute.xlu2 %1169 }
 0x1c2   : > { %1235 = vrot.lane.b32.xlu2 %v1056_v4, %s4639_s9 }
 0x1c7   : > { %1219 = vrot.lane.b32.xlu1 %v1056_v4, %s4640_s24 }
 0x1c9   : > { %1181 = vrot.lane.b32.xlu0 %v858_v12, %s4639_s9 }
 0x1ca   : > { %1251 = vrot.lane.b32.xlu2 %v1056_v4, %s4641_s21 }
 0x1cb   : > { %v1210_v25 = vpop.permute.xlu2 %1209 }
 0x1cc   : > { %3845 = vmatpush.xpose.msk.msra.mxu3 %vm1340_vm4, %v1210_v25 }
 0x1cf   : > { %1221 = vrot.lane.b32.xlu1 %v1059_v8, %s4640_s24 }
 0x1d1   : > { %1183 = vrot.lane.b32.xlu0 %v861_v20, %s4639_s9 }
 0x1d2   : > { %1167 = vrot.lane.b32.xlu2 %v861_v20, %s4640_s24 }
 0x1d3   : > { %v1158_v26 = vpop.permute.xlu2 %1157 }
 0x1d7   : > { %1237 = vrot.lane.b32.xlu1 %v1059_v8, %s4639_s9 }
 0x1d9   : > { %1223 = vrot.lane.b32.xlu0 %v5152_v14, %s4640_s24  ;;  %v1154_v29 = vpop.permute.xlu0 %1153 }
 0x1da   : > { %1199 = vrot.lane.b32.xlu2 %v861_v20, %s4641_s21  ;;  %3846 = vmatmul.msk.f32.vlgmr.msra.gmra.mxu3 %vm1340_vm4, %v1154_v29 }
 0x1db   : > { %v1212_v30 = vpop.permute.xlu2 %1211 }
 0x1dc   : > { %3847 = vmatpush.xpose.msk.msrb.mxu2 %vm1340_vm4, %v1212_v30 }
 0x1df   : > { %1197 = vrot.lane.b32.xlu1 %v858_v12, %s4641_s21 }
 0x1e1   : > { %1253 = vrot.lane.b32.xlu0 %v1059_v8, %s4641_s21  ;;  %v1156_v39 = vpop.permute.xlu1 %1155  ;;  %v5210_v40 = vpop.permute.xlu0 %1185 }
 0x1e2   : > { %4100 = vrot.lane.b32.xlu2 %v5195_v34, %s4640_s24  ;;  %3848 = vmatmul.msk.f32.vlgmr.msrb.gmra.mxu2 %vm1340_vm4, %v1156_v39 }
 0x1e4   : > { %v5213_v41 = vpop.permute.xlu2 %1227 }
 0x1e7   : > { %4095 = vrot.lane.b32.xlu1 %v4094_v42, %s4640_s24 }
 0x1e9   : > { %4105 = vrot.lane.b32.xlu0 %v4094_v42, %s4639_s9  ;;  %v5227_v44 = vpop.permute.xlu1 %1241  ;;  %v1226_v46 = vpop.permute.xlu0 %1225 }
 0x1ea   : > { %4115 = vrot.lane.b32.xlu2 %v5217_v15, %s4640_s24 }
 0x1ec   : > { %v5229_v47 = vpop.permute.xlu2 %1243 }
 0x1ef   : > { %4110 = vrot.lane.b32.xlu1 %v5235_v45, %s4640_s24 }
 0x1f1   : > { %v5241_v48 = vpop.permute.xlu1 %1171  ;;  %v5243_v49 = vpop.permute.xlu0 %1173 }
 0x1f2   : > { %1239 = vrot.lane.b32.xlu2 %v5152_v14, %s4639_s9 }
 0x1f4   : > { %v5245_v50 = vpop.permute.xlu2 %1189 }
 0x1f7   : > { %v1362_v51 = vpop.f32.mrf.mxu3  ;;  %1255 = vrot.lane.b32.xlu1 %v5152_v14, %s4641_s21 }
 0x1f8   : > { %v2109_v1 = vmul.f32 0.35355338, %v1362_v51 }
 0x1f9   : > { %v5249_v52 = vpop.permute.xlu1 %1187 }
 0x1fa   : > { %v5274_v19 = vadd.f32 %v2109_v1, %v5267_v2 }
 0x1fb   : > { %v5251_v53 = vpop.permute.xlu0 %1175 }
 0x1fc   : > { %v1160_v54 = vpop.permute.xlu2 %1159  ;;  %v2173_v11 = vsel %vm1340_vm4, %v5274_v19, -inf }
 0x1ff   : > { %v1386_v55 = vpop.f32.mrf.mxu3 }
 0x200   : > { %v2110_v8 = vmul.f32 0.35355338, %v1386_v55 }
 0x201   : > { %v1214_v56 = vpop.permute.xlu1 %1213 }
 0x202   : > { %3849 = vmatpush.xpose.msk.msrb.mxu3 %vm1340_vm4, %v1214_v56  ;;  %v5286_v18 = vadd.f32 %v2110_v8, %v5267_v2 }
 0x203   : > { %v5253_v57 = vpop.permute.xlu0 %1191 }
 0x204   : > { %v5255_v16 = vpop.permute.xlu2 %1231  ;;  %v2176_v25 = vsel %vm1340_vm4, %v5286_v18, -inf }
 0x205   : > { %3850 = vmatmul.msk.f32.vlgmr.msrb.gmra.mxu3 %vm1340_vm4, %v1158_v26 }
 0x207   : > { %v1410_v58 = vpop.f32.mrf.mxu3 }
 0x208   : > { %v2111_v10 = vmul.f32 0.35355338, %v1410_v58 }
 0x209   : > { %v5259_v59 = vpop.permute.xlu1 %1229 }
 0x20a   : > { %v5289_v20 = vadd.f32 %v2111_v10, %v5267_v2 }
 0x20b   : > { %v1216_v60 = vpop.permute.xlu0 %1215 }
 0x20c   : > { %v5261_v61 = vpop.permute.xlu2 %1247  ;;  %3851 = vmatpush.xpose.msk.msra.mxu2 %vm1340_vm4, %v1216_v60  ;;  %v2179_v26 = vsel %vm1340_vm4, %v5289_v20, -inf }
 0x20f   : > { %v1434_v63 = vpop.f32.mrf.mxu3  ;;  %3852 = vmatmul.msk.f32.vlgmr.msra.gmra.mxu2 %vm1340_vm4, %v1160_v54 }
 0x210   : > { %v2112_v24 = vmul.f32 0.35355338, %v1434_v63 }
 0x211   : > { %v5269_v3 = vpop.permute.xlu1 %1245 }
 0x212   : > { %v5302_v39 = vadd.f32 %v2112_v24, %v5267_v2 }
 0x213   : > { %v1178_v4 = vpop.permute.xlu0 %1177 }
 0x214   : > { %v5271_v5 = vpop.permute.xlu2 %1163  ;;  %v2182_v42 = vsel %vm1340_vm4, %v5302_v39, -inf }
 0x217   : > { %v1458_v6 = vpop.f32.mrf.mxu3 }
 0x218   : > { %v2113_v7 = vmul.f32 0.35355338, %v1458_v6 }
 0x219   : > { %v1162_v0 = vpop.permute.xlu1 %1161 }
 0x21a   : > { %v5279_v12 = vadd.f32 %v2113_v7, %v5267_v2 }
 0x21b   : > { %2174 = vmax.xlane.f32.xlu2 %v2173_v11  ;;  %v1218_v13 = vpop.permute.xlu0 %1217 }
 0x21c   : > { %v1236_v14 = vpop.permute.xlu2 %1235  ;;  %v2185_v17 = vsel %vm1340_vm4, %v5279_v12, -inf  ;;  %3853 = vmatpush.xpose.msk.msra.mxu3 %vm1340_vm4, %v1218_v13 }
 0x21d   : > { %2186 = vmax.xlane.f32.xlu0 %v2185_v17 }
 0x21f   : > { %v1482_v22 = vpop.f32.mrf.mxu3  ;;  %3854 = vmatmul.msk.f32.vlgmr.msra.gmra.mxu3 %vm1340_vm4, %v1162_v0 }
 0x220   : > { %3861 = vmatpush.xpose.msk.msrb.mxu3 %vm1340_vm4, %v1226_v46  ;;  %v2114_v21 = vmul.f32 0.35355338, %v1482_v22 }
 0x221   : > { %v1194_v28 = vpop.permute.xlu1 %1193  ;;  %2177 = vmax.xlane.f32.xlu1 %v2176_v25 }
 0x222   : > { %v5297_v27 = vadd.f32 %v2114_v21, %v5267_v2 }
 0x223   : > { %2180 = vmax.xlane.f32.xlu2 %v2179_v26  ;;  %v1250_v29 = vpop.permute.xlu0 %1249 }
 0x224   : > { %v1252_v30 = vpop.permute.xlu2 %1251  ;;  %v2188_v33 = vsel %vm1340_vm4, %v5297_v27, -inf }
 0x225   : > { %2189 = vmax.xlane.f32.xlu0 %v2188_v33 }
 0x227   : > { %3862 = vmatmul.msk.f32.vlgmr.msrb.gmra.mxu3 %vm1340_vm4, %v5171_v23 }
 0x229   : > { %v1234_v46 = vpop.permute.xlu1 %1233  ;;  %2183 = vmax.xlane.f32.xlu1 %v2182_v42 }
 0x22a   : > { %3869 = vmatpush.xpose.msk.msra.mxu3 %vm1340_vm4, %v1234_v46 }
 0x22b   : > { %v1196_v51 = vpop.permute.xlu0 %1195 }
 0x22c   : > { %v1506_v54 = vpop.f32.mrf.mxu3  ;;  %v1168_v56 = vpop.permute.xlu2 %1167 }
 0x22d   : > { %v2115_v55 = vmul.f32 0.35355338, %v1506_v54 }
 0x22e   : > { %3877 = vmatpush.xpose.msk.msrb.mxu3 %vm1340_vm4, %v5227_v44 }
 0x22f   : > { %v5312_v58 = vadd.f32 %v2115_v55, %v5267_v2  ;;  %3870 = vmatmul.msk.f32.vlgmr.msra.gmra.mxu3 %vm1340_vm4, %v1178_v4 }
 0x231   : > { %v2191_v23 = vsel %vm1340_vm4, %v5312_v58, -inf  ;;  %v1180_v60 = vpop.permute.xlu1 %1179 }
 0x232   : > { %3885 = vmatpush.xpose.msk.msra.mxu3 %vm1340_vm4, %v1250_v29  ;;  %2192 = vmax.xlane.f32.xlu0 %v2191_v23 }
 0x233   : > { %v1166_v62 = vpop.permute.xlu0 %1165 }
 0x234   : > { %v5318_v63 = vpop.permute.xlu2 %1199 }
 0x235   : > { %v1530_v1 = vpop.f32.mrf.mxu3 }
 0x236   : > { %v2116_v6 = vmul.f32 0.35355338, %v1530_v1 }
 0x237   : > { %3878 = vmatmul.msk.f32.vlgmr.msrb.gmra.mxu3 %vm1340_vm4, %v5210_v40 }
 0x238   : > { %2543 = vmatpush.msrb.mxu3 %v5206_v37  ;;  %v5324_v44 = vadd.f32 %v2116_v6, %v5267_v2 }
 0x239   : > { %v1220_v4 = vpop.permute.xlu1 %1219 }
 0x23a   : > { %v2194_v7 = vsel %vm1340_vm4, %v5324_v44, -inf  ;;  %3855 = vmatpush.xpose.msk.msrb.mxu0 %vm1340_vm4, %v1220_v4 }
 0x23b   : > { %v1182_v8 = vpop.permute.xlu0 %1181  ;;  %2195 = vmax.xlane.f32.xlu2 %v2194_v7 }
 0x23c   : > { %v5331_v10 = vpop.permute.xlu2 %4100 }
 0x23d   : > { %3856 = vmatmul.msk.f32.vlgmr.msrb.gmra.mxu0 %vm1340_vm4, %v5271_v5 }
 0x23e   : > { %3863 = vmatpush.xpose.msk.msra.mxu0 %vm1340_vm4, %v5213_v41 }
 0x23f   : > { %3886 = vmatmul.msk.f32.vlgmr.msra.gmra.mxu3 %vm1340_vm4, %v1194_v28 }
 0x240   : > { %2635 = vmatpush.msra.mxu3 %v5208_v38 }
 0x241   : > { %v1222_v40 = vpop.permute.xlu1 %1221 }
 0x242   : > { %3871 = vmatpush.xpose.msk.msrb.mxu0 %vm1340_vm4, %v1236_v14  ;;  %3857 = vmatpush.xpose.msk.msrb.mxu1 %vm1340_vm4, %v1222_v40 }
 0x243   : > { %v1184_v11 = vpop.permute.xlu0 %1183 }
 0x244   : > { %v5341_v0 = vpop.permute.xlu2 %4115 }
 0x245   : > { %3858 = vmatmul.msk.f32.vlgmr.msrb.gmra.mxu1 %vm1340_vm4, %v1166_v62  ;;  %3864 = vmatmul.msk.f32.vlgmr.msra.gmra.mxu0 %vm1340_vm4, %v5241_v48 }
 0x246   : > { %3865 = vmatpush.xpose.msk.msra.mxu1 %vm1340_vm4, %v5259_v59  ;;  %3879 = vmatpush.xpose.msk.msra.mxu0 %vm1340_vm4, %v5229_v47 }
 0x249   : > { %v1238_v41 = vpop.permute.xlu1 %1237 }
 0x24a   : > { %3873 = vmatpush.xpose.msk.msrb.mxu1 %vm1340_vm4, %v1238_v41 }
 0x24b   : > { %v1224_v5 = vpop.permute.xlu0 %1223 }
 0x24c   : > { %3859 = vmatpush.xpose.msk.msrb.mxu2 %vm1340_vm4, %v1224_v5  ;;  %v1240_v47 = vpop.permute.xlu2 %1239 }
 0x24d   : > { %3866 = vmatmul.msk.f32.vlgmr.msra.gmra.mxu1 %vm1340_vm4, %v5243_v49  ;;  %3872 = vmatmul.msk.f32.vlgmr.msrb.gmra.mxu0 %vm1340_vm4, %v1180_v60 }
 0x24e   : > { %3881 = vmatpush.xpose.msk.msra.mxu1 %vm1340_vm4, %v5269_v3  ;;  %3887 = vmatpush.xpose.msk.msrb.mxu0 %vm1340_vm4, %v1252_v30 }
 0x24f   : > { %3860 = vmatmul.msk.f32.vlgmr.msrb.gmra.mxu2 %vm1340_vm4, %v1168_v56 }
 0x250   : > { %3867 = vmatpush.xpose.msk.msra.mxu2 %vm1340_vm4, %v5255_v16 }
 0x251   : > { %v1198_v48 = vpop.permute.xlu1 %1197 }
 0x253   : > { %v1254_v59 = vpop.permute.xlu0 %1253 }
 0x254   : > { %3875 = vmatpush.xpose.msk.msrb.mxu2 %vm1340_vm4, %v1240_v47 }
 0x255   : > { %3874 = vmatmul.msk.f32.vlgmr.msrb.gmra.mxu1 %vm1340_vm4, %v1182_v8  ;;  %3880 = vmatmul.msk.f32.vlgmr.msra.gmra.mxu0 %vm1340_vm4, %v5249_v52 }
 0x256   : > { %3889 = vmatpush.xpose.msk.msrb.mxu1 %vm1340_vm4, %v1254_v59  ;;  %2566 = vmatpush.msra.mxu0 %v5191_v32 }
 0x257   : > { %3868 = vmatmul.msk.f32.vlgmr.msra.gmra.mxu2 %vm1340_vm4, %v5251_v53 }
 0x258   : > { %3883 = vmatpush.xpose.msk.msra.mxu2 %vm1340_vm4, %v5261_v61 }
 0x259   : > { %v5369_v49 = vpop.permute.xlu1 %4095 }
 0x25d   : > { %v1554_v16 = vpop.f32.mrf.mxu3  ;;  %3882 = vmatmul.msk.f32.vlgmr.msra.gmra.mxu1 %vm1340_vm4, %v5245_v50  ;;  %3888 = vmatmul.msk.f32.vlgmr.msrb.gmra.mxu0 %vm1340_vm4, %v1196_v51 }
 0x25e   : > { %v2117_v3 = vmul.f32 0.35355338, %v1554_v16  ;;  %2589 = vmatpush.msra.mxu1 %v5187_v31  ;;  %2658 = vmatpush.msrb.mxu0 %v5225_v43 }
 0x25f   : > { %3876 = vmatmul.msk.f32.vlgmr.msrb.gmra.mxu2 %vm1340_vm4, %v1184_v11 }
 0x260   : > { %v5378_v52 = vadd.f32 %v2117_v3, %v5267_v2 }
 0x261   : > { %v5380_v53 = vpop.permute.xlu1 %4110 }
 0x262   : > { %v2197_v61 = vsel %vm1340_vm4, %v5378_v52, -inf }
 0x263   : > { %2198 = vmax.xlane.f32.xlu2 %v2197_v61 }
 0x265   : > { %v1578_v13 = vpop.f32.mrf.mxu2  ;;  %3890 = vmatmul.msk.f32.vlgmr.msrb.gmra.mxu1 %vm1340_vm4, %v1198_v48 }
 0x266   : > { %v2118_v50 = vmul.f32 0.35355338, %v1578_v13  ;;  %2681 = vmatpush.msrb.mxu1 %v5198_v35 }
 0x267   : > { %3884 = vmatmul.msk.f32.vlgmr.msra.gmra.mxu2 %vm1340_vm4, %v5253_v57  ;;  %v5398_v57 = vpop.permute.xlu0 %4105 }
 0x268   : > { %v5389_v14 = vadd.f32 %v2118_v50, %v5267_v2 }
 0x269   : > { %v1256_v17 = vpop.permute.xlu1 %1255 }
 0x26a   : > { %3891 = vmatpush.xpose.msk.msrb.mxu2 %vm1340_vm4, %v1256_v17  ;;  %v2200_v22 = vsel %vm1340_vm4, %v5389_v14, -inf }
 0x26b   : > { %2201 = vmax.xlane.f32.xlu1 %v2200_v22 }
 0x26e   : > { %2612 = vmatpush.msra.mxu2 %v5231_v9 }
 0x26f   : > { %3892 = vmatmul.msk.f32.vlgmr.msrb.gmra.mxu2 %vm1340_vm4, %v5318_v63 }
 0x270   : > { %2704 = vmatpush.msrb.mxu2 %v5203_v36 }
 0x288   : > { %v1602_v35 = vpop.f32.mrf.mxu3 }
 0x289   : > { %v2119_v21 = vmul.f32 0.35355338, %v1602_v35 }
 0x28b   : > { %v5401_v24 = vadd.f32 %v2119_v21, %v5267_v2 }
 0x28d   : > { %v2203_v28 = vsel %vm1340_vm4, %v5401_v24, -inf }
 0x28e   : > { %v2175_v25 = vpop.xlane.xlu2 %2174  ;;  %2204 = vmax.xlane.f32.xlu1 %v2203_v28 }
 0x28f   : > { %v2269_v26 = vsub.f32 %v5274_v19, %v2175_v25 }
 0x290   : > { %v2187_v29 = vpop.xlane.xlu0 %2186 }
 0x291   : > { %v2301_v30 = vmul.f32 1.442695, %v2269_v26  ;;  %v2273_v33 = vsub.f32 %v5279_v12, %v2187_v29 }
 0x292   : > { %v1626_v51 = vpop.f32.mrf.mxu2 }
 0x293   : > { %4158 = vpow2.f32 %v2301_v30  ;;  %v2309_v36 = vmul.f32 1.442695, %v2273_v33  ;;  %v2120_v23 = vmul.f32 0.35355338, %v1626_v51 }
 0x294   : > { %v2178_v42 = vpop.xlane.xlu1 %2177 }
 0x295   : > { %4160 = vpow2.f32 %v2309_v36  ;;  %v2270_v54 = vsub.f32 %v5286_v18, %v2178_v42  ;;  %v5418_v18 = vadd.f32 %v2120_v23, %v5267_v2 }
 0x296   : > { %v2181_v46 = vpop.xlane.xlu2 %2180 }
 0x297   : > { %v2303_v56 = vmul.f32 1.442695, %v2270_v54  ;;  %v2271_v19 = vsub.f32 %v5289_v20, %v2181_v46  ;;  %v2206_v20 = vsel %vm1340_vm4, %v5418_v18, -inf }
 0x298   : > { %v2190_v30 = vpop.xlane.xlu0 %2189 }
 0x299   : > { %v5408_v55 = vpop.eup %4158  ;;  %4162 = vpow2.f32 %v2303_v56  ;;  %v2305_v63 = vmul.f32 1.442695, %v2271_v19  ;;  %v2274_v46 = vsub.f32 %v5297_v27, %v2190_v30 }
 0x29a   : > { %v2365_v60 = vsel %vm1340_vm4, %v5408_v55, 0.0 }
 0x29b   : > { %v5413_v62 = vpop.eup %4160  ;;  %2366 = vadd.xlane.f32.xlu0 %v2365_v60  ;;  %4164 = vpow2.f32 %v2305_v63  ;;  %v2311_v60 = vmul.f32 1.442695, %v2274_v46 }
 0x29c   : > { %v2377_v12 = vsel %vm1340_vm4, %v5413_v62, 0.0  ;;  %v2184_v61 = vpop.xlane.xlu1 %2183 }
 0x29d   : > { %2378 = vadd.xlane.f32.xlu1 %v2377_v12  ;;  %v2272_v50 = vsub.f32 %v5302_v39, %v2184_v61 }
 0x29f   : > { %v5420_v1 = vpop.eup %4162  ;;  %v2307_v22 = vmul.f32 1.442695, %v2272_v50 }
 0x2a0   : > { %v2368_v6 = vsel %vm1340_vm4, %v5420_v1, 0.0 }
 0x2a1   : > { %2369 = vadd.xlane.f32.xlu2 %v2368_v6  ;;  %v5429_v40 = vpop.eup %4164  ;;  %4166 = vpow2.f32 %v2307_v22 }
 0x2a2   : > { %v1650_v4 = vpop.f32.mrf.mxu3  ;;  %v2371_v11 = vsel %vm1340_vm4, %v5429_v40, 0.0  ;;  %4168 = vpow2.f32 %v2311_v60 }
 0x2a3   : > { %2207 = vmax.xlane.f32.xlu0 %v2206_v20  ;;  %v2121_v7 = vmul.f32 0.35355338, %v1650_v4 }
 0x2a5   : > { %v5427_v8 = vadd.f32 %v2121_v7, %v5267_v2  ;;  %v2193_v12 = vpop.xlane.xlu0 %2192 }
 0x2a6   : > { %v2275_v6 = vsub.f32 %v5312_v58, %v2193_v12 }
 0x2a7   : > { %v2209_v41 = vsel %vm1340_vm4, %v5427_v8, -inf  ;;  %v5451_v39 = vpop.eup %4166 }
 0x2a8   : > { %v2374_v51 = vsel %vm1340_vm4, %v5451_v39, 0.0  ;;  %v5475_v61 = vpop.eup %4168 }
 0x2a9   : > { %2210 = vmax.xlane.f32.xlu2 %v2209_v41  ;;  %v2313_v41 = vmul.f32 1.442695, %v2275_v6 }
 0x2aa   : > { %v1746_v5 = vpop.f32.mrf.mxu3 }
 0x2ab   : > { %2372 = vadd.xlane.f32.xlu0 %v2371_v11  ;;  %v2125_v47 = vmul.f32 0.35355338, %v1746_v5  ;;  %4170 = vpow2.f32 %v2313_v41 }
 0x2ad   : > { %v5436_v48 = vadd.f32 %v2125_v47, %v5267_v2 }
 0x2af   : > { %v2221_v59 = vsel %vm1340_vm4, %v5436_v48, -inf }
 0x2b1   : > { %v5489_v30 = vpop.eup %4170 }
 0x2b2   : > { %v1842_v16 = vpop.f32.mrf.mxu3 }
 0x2b3   : > { %2222 = vmax.xlane.f32.xlu0 %v2221_v59  ;;  %v2129_v3 = vmul.f32 0.35355338, %v1842_v16 }
 0x2b5   : > { %v5441_v13 = vadd.f32 %v2129_v3, %v5267_v2 }
 0x2b7   : > { %v2233_v17 = vsel %vm1340_vm4, %v5441_v13, -inf }
 0x2b8   : > { %2234 = vmax.xlane.f32.xlu1 %v2233_v17 }
 0x2ba   : > { %v1674_v35 = vpop.f32.mrf.mxu0  ;;  %v1938_v3 = vpop.f32.mrf.mxu3 }
 0x2bb   : > { %v2122_v21 = vmul.f32 0.35355338, %v1674_v35  ;;  %v2133_v50 = vmul.f32 0.35355338, %v1938_v3 }
 0x2bd   : > { %v5447_v25 = vadd.f32 %v2122_v21, %v5267_v2  ;;  %v2380_v21 = vsel %vm1340_vm4, %v5475_v61, 0.0 }
 0x2bf   : > { %v2212_v26 = vsel %vm1340_vm4, %v5447_v25, -inf }
 0x2c0   : > { %2213 = vmax.xlane.f32.xlu2 %v2212_v26 }
 0x2c2   : > { %v1698_v28 = vpop.f32.mrf.mxu1  ;;  %v1770_v29 = vpop.f32.mrf.mxu0 }
 0x2c3   : > { %v2126_v33 = vmul.f32 0.35355338, %v1770_v29  ;;  %v2123_v36 = vmul.f32 0.35355338, %v1698_v28  ;;  %v2196_v28 = vpop.xlane.xlu2 %2195  ;;  %v5487_v29 = vadd.f32 %v2133_v50, %v5267_v2 }
 0x2c4   : > { %v2276_v46 = vsub.f32 %v5324_v44, %v2196_v28 }
 0x2c5   : > { %v5454_v42 = vadd.f32 %v2126_v33, %v5267_v2  ;;  %v5462_v56 = vadd.f32 %v2123_v36, %v5267_v2 }
 0x2c7   : > { %v2224_v54 = vsel %vm1340_vm4, %v5454_v42, -inf  ;;  %v2215_v20 = vsel %vm1340_vm4, %v5462_v56, -inf }
 0x2c8   : > { %2375 = vadd.xlane.f32.xlu2 %v2374_v51  ;;  %2225 = vmax.xlane.f32.xlu0 %v2224_v54 }
 0x2ca   : > { %v1794_v19 = vpop.f32.mrf.mxu1  ;;  %v1866_v23 = vpop.f32.mrf.mxu0 }
 0x2cb   : > { %v2127_v63 = vmul.f32 0.35355338, %v1794_v19  ;;  %v2130_v4 = vmul.f32 0.35355338, %v1866_v23  ;;  %v2383_v19 = vsel %vm1340_vm4, %v5489_v30, 0.0  ;;  %v2245_v23 = vsel %vm1340_vm4, %v5487_v29, -inf }
 0x2cd   : > { %v5467_v27 = vadd.f32 %v2127_v63, %v5267_v2  ;;  %v5473_v16 = vadd.f32 %v2130_v4, %v5267_v2  ;;  %v2034_v4 = vpop.f32.mrf.mxu3 }
 0x2cf   : > { %v2227_v7 = vsel %vm1340_vm4, %v5467_v27, -inf  ;;  %v2236_v17 = vsel %vm1340_vm4, %v5473_v16, -inf }
 0x2d0   : > { %2216 = vmax.xlane.f32.xlu2 %v2215_v20  ;;  %2228 = vmax.xlane.f32.xlu1 %v2227_v7  ;;  %v2315_v20 = vmul.f32 1.442695, %v2276_v46 }
 0x2d2   : > { %v1722_v11 = vpop.f32.mrf.mxu2  ;;  %v1962_v5 = vpop.f32.mrf.mxu0  ;;  %4172 = vpow2.f32 %v2315_v20 }
 0x2d3   : > { %v1890_v47 = vpop.f32.mrf.mxu1  ;;  %v2134_v59 = vmul.f32 0.35355338, %v1962_v5  ;;  %v2124_v35 = vmul.f32 0.35355338, %v1722_v11  ;;  %v2137_v11 = vmul.f32 0.35355338, %v2034_v4 }
 0x2d4   : > { %v2131_v51 = vmul.f32 0.35355338, %v1890_v47 }
 0x2d5   : > { %v5478_v58 = vadd.f32 %v2134_v59, %v5267_v2  ;;  %v5492_v33 = vadd.f32 %v2124_v35, %v5267_v2 }
 0x2d6   : > { %v5505_v44 = vadd.f32 %v2131_v51, %v5267_v2  ;;  %v2199_v50 = vpop.xlane.xlu2 %2198 }
 0x2d7   : > { %v2248_v22 = vsel %vm1340_vm4, %v5478_v58, -inf  ;;  %v2218_v12 = vsel %vm1340_vm4, %v5492_v33, -inf }
 0x2d8   : > { %2237 = vmax.xlane.f32.xlu2 %v2236_v17  ;;  %2249 = vmax.xlane.f32.xlu0 %v2248_v22  ;;  %v2239_v5 = vsel %vm1340_vm4, %v5505_v44, -inf  ;;  %v5517_v17 = vadd.f32 %v2137_v11, %v5267_v2  ;;  %v5519_v22 = vpop.eup %4172 }
 0x2d9   : > { %2381 = vadd.xlane.f32.xlu1 %v2380_v21 }
 0x2da   : > { %v1818_v26 = vpop.f32.mrf.mxu2  ;;  %v2058_v35 = vpop.f32.mrf.mxu0  ;;  %v2257_v46 = vsel %vm1340_vm4, %v5517_v17, -inf }
 0x2db   : > { %v1986_v36 = vpop.f32.mrf.mxu1  ;;  %v2128_v54 = vmul.f32 0.35355338, %v1818_v26  ;;  %v2277_v26 = vsub.f32 %v5378_v52, %v2199_v50  ;;  %v2138_v28 = vmul.f32 0.35355338, %v2058_v35 }
 0x2dc   : > { %v2135_v60 = vmul.f32 0.35355338, %v1986_v36  ;;  %v2386_v36 = vsel %vm1340_vm4, %v5519_v22, 0.0 }
 0x2dd   : > { %v5502_v6 = vadd.f32 %v2128_v54, %v5267_v2 }
 0x2de   : > { %v5508_v7 = vadd.f32 %v2135_v60, %v5267_v2  ;;  %v5532_v60 = vadd.f32 %v2138_v28, %v5267_v2  ;;  %v2202_v11 = vpop.xlane.xlu1 %2201 }
 0x2df   : > { %v2230_v41 = vsel %vm1340_vm4, %v5502_v6, -inf }
 0x2e0   : > { %2384 = vadd.xlane.f32.xlu0 %v2383_v19  ;;  %2246 = vmax.xlane.f32.xlu2 %v2245_v23  ;;  %v2251_v59 = vsel %vm1340_vm4, %v5508_v7, -inf  ;;  %v2317_v19 = vmul.f32 1.442695, %v2277_v26  ;;  %v2260_v20 = vsel %vm1340_vm4, %v5532_v60, -inf }
 0x2e1   : > { %2219 = vmax.xlane.f32.xlu1 %v2218_v12 }
 0x2e2   : > { %v1914_v63 = vpop.f32.mrf.mxu2  ;;  %4174 = vpow2.f32 %v2317_v19 }
 0x2e3   : > { %v2132_v47 = vmul.f32 0.35355338, %v1914_v63  ;;  %v2082_v12 = vpop.f32.mrf.mxu1 }
 0x2e4   : > { %v2139_v4 = vmul.f32 0.35355338, %v2082_v12 }
 0x2e5   : > { %v5522_v21 = vadd.f32 %v2132_v47, %v5267_v2  ;;  %v2278_v47 = vsub.f32 %v5389_v14, %v2202_v11  ;;  %v4097_v11 = vunpack.i.l.bf16 %v5369_v49 }
 0x2e7   : > { %v2242_v51 = vsel %vm1340_vm4, %v5522_v21, -inf  ;;  %v2319_v26 = vmul.f32 1.442695, %v2278_v47 }
 0x2e8   : > { %2231 = vmax.xlane.f32.xlu0 %v2230_v41  ;;  %2240 = vmax.xlane.f32.xlu2 %v2239_v5  ;;  %v5542_v41 = vadd.f32 %v2139_v4, %v5267_v2  ;;  %v5544_v5 = vpop.eup %4174 }
 0x2e9   : > { %2252 = vmax.xlane.f32.xlu1 %v2251_v59  ;;  %v2389_v50 = vsel %vm1340_vm4, %v5544_v5, 0.0  ;;  %4176 = vpow2.f32 %v2319_v26 }
 0x2ea   : > { %v2010_v3 = vpop.f32.mrf.mxu2  ;;  %v2263_v35 = vsel %vm1340_vm4, %v5542_v41, -inf }
 0x2eb   : > { %v2136_v59 = vmul.f32 0.35355338, %v2010_v3 }
 0x2ef   : > { %v5557_v3 = vpop.eup %4176 }
 0x2f0   : > { %2387 = vadd.xlane.f32.xlu0 %v2386_v36  ;;  %2258 = vmax.xlane.f32.xlu2 %v2257_v46  ;;  %v5553_v46 = vadd.f32 %v2136_v59, %v5267_v2 }
 0x2f1   : > { %2243 = vmax.xlane.f32.xlu1 %v2242_v51 }
 0x2f2   : > { %v2106_v54 = vpop.f32.mrf.mxu2  ;;  %v2254_v14 = vsel %vm1340_vm4, %v5553_v46, -inf }
 0x2f3   : > { %v2140_v23 = vmul.f32 0.35355338, %v2106_v54 }
 0x2f5   : > { %v5535_v52 = vadd.f32 %v2140_v23, %v5267_v2  ;;  %v2392_v2 = vsel %vm1340_vm4, %v5557_v3, 0.0 }
 0x2f7   : > { %v2266_v63 = vsel %vm1340_vm4, %v5535_v52, -inf }
 0x2f8   : > { %2267 = vmax.xlane.f32.xlu0 %v2266_v63  ;;  %2261 = vmax.xlane.f32.xlu2 %v2260_v20 }
 0x300   : > { %2390 = vadd.xlane.f32.xlu0 %v2389_v50  ;;  %2264 = vmax.xlane.f32.xlu2 %v2263_v35 }
 0x301   : > { %v2205_v28 = vpop.xlane.xlu1 %2204 }
 0x302   : > { %v2279_v36 = vsub.f32 %v5401_v24, %v2205_v28 }
 0x304   : > { %v2321_v51 = vmul.f32 1.442695, %v2279_v36 }
 0x306   : > { %4178 = vpow2.f32 %v2321_v51  ;;  %v4102_v51 = vunpack.i.l.bf16 %v5331_v10 }
 0x308   : > { %2255 = vmax.xlane.f32.xlu2 %v2254_v14  ;;  %v4098_v14 = vunpack.i.h.bf16 %v5369_v49 }
 0x30c   : > { %v5559_v54 = vpop.eup %4178 }
 0x30d   : > { %v2395_v23 = vsel %vm1340_vm4, %v5559_v54, 0.0 }
 0x30e   : > { %v2367_v19 = vpop.xlane.xlu0 %2366  ;;  %2396 = vadd.xlane.f32.xlu0 %v2395_v23 }
 0x30f   : > { %4180 = vrcp.f32 %v2367_v19 }
 0x310   : > { %v2379_v24 = vpop.xlane.xlu1 %2378  ;;  %2393 = vadd.xlane.f32.xlu2 %v2392_v2 }
 0x311   : > { %4182 = vrcp.f32 %v2379_v24 }
 0x314   : > { %v2370_v4 = vpop.xlane.xlu2 %2369 }
 0x315   : > { %v4181_v12 = vpop.eup %4180  ;;  %4184 = vrcp.f32 %v2370_v4 }
 0x316   : > { %v2493_v63 = vmul.f32 %v4181_v12, %v5408_v55  ;;  %v2208_v20 = vpop.xlane.xlu0 %2207 }
 0x317   : > { %v2280_v47 = vsub.f32 %v5418_v18, %v2208_v20  ;;  %v4183_v50 = vpop.eup %4182 }
 0x318   : > { %3893 = vmatmul.msk.f32.vlgmr.msrb.gmra.mxu3 %vm1340_vm4, %v2493_v63  ;;  %v2497_v26 = vmul.f32 %v4183_v50, %v5413_v62 }
 0x319   : > { %v2323_v59 = vmul.f32 1.442695, %v2280_v47  ;;  %2727 = vmatpush.msrb.mxu3 %v4097_v11 }
 0x31b   : > { %4186 = vpow2.f32 %v2323_v59  ;;  %v4185_v35 = vpop.eup %4184 }
 0x31c   : > { %v2494_v28 = vmul.f32 %v4185_v35, %v5420_v1  ;;  %v2211_v55 = vpop.xlane.xlu2 %2210 }
 0x31d   : > { %v2281_v18 = vsub.f32 %v5427_v8, %v2211_v55  ;;  %v4103_v8 = vunpack.i.h.bf16 %v5331_v10 }
 0x31e   : > { %v2373_v36 = vpop.xlane.xlu0 %2372  ;;  %3894 = vmatmul.msk.f32.vlgmr.msra.gmra.mxu0 %vm1340_vm4, %v2494_v28 }
 0x31f   : > { %4188 = vrcp.f32 %v2373_v36  ;;  %v2325_v23 = vmul.f32 1.442695, %v2281_v18  ;;  %2750 = vmatpush.msra.mxu0 %v4102_v51 }
 0x320   : > { %3897 = vmatmul.msk.f32.vlgmr.msra.gmra.mxu3 %vm1340_vm4, %v2497_v26 }
 0x321   : > { %v5576_v19 = vpop.eup %4186  ;;  %2819 = vmatpush.msra.mxu3 %v4098_v14  ;;  %4190 = vpow2.f32 %v2325_v23 }
 0x322   : > { %v2398_v62 = vsel %vm1340_vm4, %v5576_v19, 0.0 }
 0x323   : > { %2399 = vadd.xlane.f32.xlu0 %v2398_v62  ;;  %v4113_v62 = vunpack.i.h.bf16 %v5380_v53 }
 0x325   : > { %v4189_v1 = vpop.eup %4188 }
 0x326   : > { %v2495_v49 = vmul.f32 %v4189_v1, %v5429_v40  ;;  %v2223_v2 = vpop.xlane.xlu0 %2222 }
 0x327   : > { %v2285_v24 = vsub.f32 %v5436_v48, %v2223_v2  ;;  %v5584_v12 = vpop.eup %4190  ;;  %v4124_v2 = vpack.i.bf16 %v5191_v32, %v5206_v37 }
 0x328   : > { %3895 = vmatmul.msk.f32.vlgmr.msra.gmra.mxu1 %vm1340_vm4, %v2495_v49  ;;  %v2401_v20 = vsel %vm1340_vm4, %v5584_v12, 0.0 }
 0x329   : > { %v2333_v63 = vmul.f32 1.442695, %v2285_v24  ;;  %2773 = vmatpush.msra.mxu1 %v4103_v8 }
 0x32b   : > { %4192 = vpow2.f32 %v2333_v63  ;;  %2402 = vadd.xlane.f32.xlu0 %v2401_v20  ;;  %v2235_v47 = vpop.xlane.xlu1 %2234 }
 0x32c   : > { %v2289_v28 = vsub.f32 %v5441_v13, %v2235_v47  ;;  %v4112_v47 = vunpack.i.l.bf16 %v5380_v53 }
 0x331   : > { %v5588_v4 = vpop.eup %4192 }
 0x332   : > { %v2413_v40 = vsel %vm1340_vm4, %v5588_v4, 0.0 }
 0x333   : > { %2414 = vadd.xlane.f32.xlu2 %v2413_v40  ;;  %v2214_v10 = vpop.xlane.xlu2 %2213 }
 0x334   : > { %v2282_v48 = vsub.f32 %v5447_v25, %v2214_v10  ;;  %v2341_v25 = vmul.f32 1.442695, %v2289_v28 }
 0x336   : > { %v2327_v11 = vmul.f32 1.442695, %v2282_v48 }
 0x338   : > { %4194 = vpow2.f32 %v2327_v11 }
 0x33b   : > { %v2376_v59 = vpop.xlane.xlu2 %2375  ;;  %v2226_v50 = vpop.xlane.xlu0 %2225 }
 0x33c   : > { %4196 = vrcp.f32 %v2376_v59  ;;  %v2286_v35 = vsub.f32 %v5454_v42, %v2226_v50 }
 0x33e   : > { %v5594_v26 = vpop.eup %4194  ;;  %v2335_v36 = vmul.f32 1.442695, %v2286_v35 }
 0x33f   : > { %v2404_v55 = vsel %vm1340_vm4, %v5594_v26, 0.0 }
 0x340   : > { %4198 = vpow2.f32 %v2335_v36  ;;  %2405 = vadd.xlane.f32.xlu1 %v2404_v55  ;;  %v4117_v55 = vunpack.i.l.bf16 %v5341_v0 }
 0x341   : > { %4200 = vpow2.f32 %v2341_v25 }
 0x342   : > { %v4197_v51 = vpop.eup %4196 }
 0x343   : > { %v2496_v14 = vmul.f32 %v4197_v51, %v5451_v39  ;;  %v2217_v18 = vpop.xlane.xlu2 %2216  ;;  %v2229_v23 = vpop.xlane.xlu1 %2228 }
 0x344   : > { %v2283_v42 = vsub.f32 %v5462_v56, %v2217_v18 }
 0x345   : > { %3896 = vmatmul.msk.f32.vlgmr.msra.gmra.mxu2 %vm1340_vm4, %v2496_v14 }
 0x346   : > { %v5603_v1 = vpop.eup %4198  ;;  %v2329_v13 = vmul.f32 1.442695, %v2283_v42  ;;  %2796 = vmatpush.msra.mxu2 %v4113_v62 }
 0x347   : > { %v2416_v49 = vsel %vm1340_vm4, %v5603_v1, 0.0  ;;  %v5614_v8 = vpop.eup %4200 }
 0x348   : > { %4202 = vpow2.f32 %v2329_v13  ;;  %2417 = vadd.xlane.f32.xlu0 %v2416_v49  ;;  %v2425_v32 = vsel %vm1340_vm4, %v5614_v8, 0.0 }
 0x34b   : > { %4125 = vrot.lane.b32.xlu2 %v4124_v2, %s4641_s21  ;;  %v5610_v39 = vpop.xlane.xlu2 %2237  ;;  %v5612_v56 = vpop.xlane.xlu0 %2249 }
 0x34c   : > { %v2382_v24 = vpop.xlane.xlu1 %2381 }
 0x34d   : > { %4204 = vrcp.f32 %v2382_v24 }
 0x34e   : > { %v5616_v63 = vpop.eup %4202 }
 0x34f   : > { %v2407_v20 = vsel %vm1340_vm4, %v5616_v63, 0.0 }
 0x350   : > { %2408 = vadd.xlane.f32.xlu1 %v2407_v20  ;;  %2426 = vadd.xlane.f32.xlu0 %v2425_v32  ;;  %v2290_v32 = vsub.f32 %v5473_v16, %v5610_v39 }
 0x353   : > { %v4205_v37 = vpop.eup %4204  ;;  %v2385_v40 = vpop.xlane.xlu0 %2384 }
 0x354   : > { %v2247_v10 = vpop.xlane.xlu2 %2246  ;;  %v2498_v48 = vmul.f32 %v4205_v37, %v5475_v61  ;;  %4206 = vrcp.f32 %v2385_v40  ;;  %v2220_v14 = vpop.xlane.xlu1 %2219 }
 0x355   : > { %v2293_v11 = vsub.f32 %v5487_v29, %v2247_v10  ;;  %v2287_v29 = vsub.f32 %v5467_v27, %v2229_v23  ;;  %v2284_v18 = vsub.f32 %v5492_v33, %v2220_v14  ;;  %v4118_v27 = vunpack.i.h.bf16 %v5341_v0 }
 0x356   : > { %3898 = vmatmul.msk.f32.vlgmr.msrb.gmra.mxu0 %vm1340_vm4, %v2498_v48  ;;  %v4107_v10 = vunpack.i.l.bf16 %v5398_v57  ;;  %v2343_v48 = vmul.f32 1.442695, %v2290_v32 }
 0x357   : > { %v2349_v59 = vmul.f32 1.442695, %v2293_v11  ;;  %2842 = vmatpush.msrb.mxu0 %v4112_v47  ;;  %v2331_v23 = vmul.f32 1.442695, %v2284_v18  ;;  %v4139_v11 = vpack.i.bf16 %v5231_v9, %v5187_v31 }
 0x359   : > { %4208 = vpow2.f32 %v2349_v59 }
 0x35a   : > { %v4207_v50 = vpop.eup %4206 }
 0x35b   : > { %v2499_v35 = vmul.f32 %v4207_v50, %v5489_v30  ;;  %v5627_v28 = vpop.xlane.xlu0 %2231  ;;  %v2337_v30 = vmul.f32 1.442695, %v2287_v29 }
 0x35c   : > { %v2241_v36 = vpop.xlane.xlu2 %2240  ;;  %v2253_v18 = vpop.xlane.xlu1 %2252 }
 0x35d   : > { %3899 = vmatmul.msk.f32.vlgmr.msrb.gmra.mxu1 %vm1340_vm4, %v2499_v35  ;;  %v2291_v16 = vsub.f32 %v5505_v44, %v2241_v36 }
 0x35e   : > { %2865 = vmatpush.msrb.mxu1 %v4117_v55 }
 0x35f   : > { %v5631_v61 = vpop.eup %4208  ;;  %v2345_v39 = vmul.f32 1.442695, %v2291_v16 }
 0x360   : > { %v2437_v53 = vsel %vm1340_vm4, %v5631_v61, 0.0 }
 0x361   : > { %2438 = vadd.xlane.f32.xlu1 %v2437_v53 }
 0x363   : > { %v2388_v51 = vpop.xlane.xlu0 %2387 }
 0x364   : > { %v5636_v25 = vpop.xlane.xlu2 %2258  ;;  %4210 = vrcp.f32 %v2388_v51  ;;  %4120 = vrot.lane.b32.xlu0 %v5195_v34, %s4639_s9  ;;  %v2294_v51 = vsub.f32 %v5478_v58, %v5612_v56  ;;  %v2288_v58 = vsub.f32 %v5502_v6, %v5627_v28  ;;  %v2295_v6 = vsub.f32 %v5508_v7, %v2253_v18 }
 0x365   : > { %4212 = vpow2.f32 %v2337_v30 }
 0x366   : > { %4214 = vpow2.f32 %v2331_v23 }
 0x36a   : > { %v4211_v62 = vpop.eup %4210 }
 0x36b   : > { %v2500_v42 = vmul.f32 %v4211_v62, %v5519_v22  ;;  %v5642_v13 = vpop.xlane.xlu0 %2267  ;;  %v5648_v2 = vpop.eup %4212  ;;  %v2351_v62 = vmul.f32 1.442695, %v2294_v51  ;;  %v4144_v51 = vpack.i.bf16 %v5225_v43, %v5208_v38 }
 0x36c   : > { %v5644_v49 = vpop.xlane.xlu2 %2261  ;;  %v2419_v34 = vsel %vm1340_vm4, %v5648_v2, 0.0  ;;  %v5652_v22 = vpop.eup %4214 }
 0x36d   : > { %3900 = vmatmul.msk.f32.vlgmr.msrb.gmra.mxu2 %vm1340_vm4, %v2500_v42  ;;  %v2410_v0 = vsel %vm1340_vm4, %v5652_v22, 0.0 }
 0x36e   : > { %2888 = vmatpush.msrb.mxu2 %v4118_v27 }
 0x373   : > { %v2391_v33 = vpop.xlane.xlu0 %2390 }
 0x374   : > { %2420 = vadd.xlane.f32.xlu2 %v2419_v34  ;;  %v2265_v24 = vpop.xlane.xlu2 %2264  ;;  %4216 = vrcp.f32 %v2391_v33  ;;  %v4108_v34 = vunpack.i.h.bf16 %v5398_v57  ;;  %v2339_v33 = vmul.f32 1.442695, %v2288_v58 }
 0x37a   : > { %4135 = vrot.lane.b32.xlu1 %v5217_v15, %s4639_s9  ;;  %v4217_v20 = vpop.eup %4216 }
 0x37b   : > { %v2501_v37 = vmul.f32 %v4217_v20, %v5544_v5 }
 0x37c   : > { %2411 = vadd.xlane.f32.xlu2 %v2410_v0  ;;  %v2256_v40 = vpop.xlane.xlu2 %2255  ;;  %v2244_v0 = vpop.xlane.xlu1 %2243 }
 0x37d   : > { %3901 = vmatmul.msk.f32.vlgmr.msrb.gmra.mxu3 %vm1340_vm4, %v2501_v37  ;;  %v2296_v31 = vsub.f32 %v5553_v46, %v2256_v40  ;;  %v2353_v37 = vmul.f32 1.442695, %v2295_v6 }
 0x37e   : > { %2911 = vmatpush.msrb.mxu3 %v4107_v10 }
 0x37f   : > { %v2355_v44 = vmul.f32 1.442695, %v2296_v31 }
 0x381   : > { %v2397_v47 = vpop.xlane.xlu0 %2396 }
 0x382   : > { %4140 = vrot.lane.b32.xlu1 %v4139_v11, %s4641_s21  ;;  %4218 = vrcp.f32 %v2397_v47  ;;  %v2298_v47 = vsub.f32 %v5532_v60, %v5644_v49 }
 0x383   : > { %4220 = vpow2.f32 %v2343_v48 }
 0x384   : > { %v2394_v59 = vpop.xlane.xlu2 %2393  ;;  %v2359_v16 = vmul.f32 1.442695, %v2298_v47 }
 0x385   : > { %4222 = vrcp.f32 %v2394_v59 }
 0x386   : > { %4224 = vpow2.f32 %v2345_v39 }
 0x387   : > { %4226 = vpow2.f32 %v2355_v44 }
 0x388   : > { %v4219_v5 = vpop.eup %4218 }
 0x389   : > { %v5667_v50 = vpop.eup %4220  ;;  %v2503_v35 = vmul.f32 %v4219_v5, %v5559_v54 }
 0x38a   : > { %v2428_v9 = vsel %vm1340_vm4, %v5667_v50, 0.0 }
 0x38b   : > { %v4223_v55 = vpop.eup %4222  ;;  %3903 = vmatmul.msk.f32.vlgmr.msra.gmra.mxu1 %vm1340_vm4, %v2503_v35 }
 0x38c   : > { %v2502_v53 = vmul.f32 %v4223_v55, %v5557_v3  ;;  %v5676_v36 = vpop.eup %4224  ;;  %v2297_v3 = vsub.f32 %v5517_v17, %v5636_v25 }
 0x38d   : > { %v2431_v46 = vsel %vm1340_vm4, %v5676_v36, 0.0  ;;  %v5686_v30 = vpop.eup %4226 }
 0x38e   : > { %3902 = vmatmul.msk.f32.vlgmr.msra.gmra.mxu0 %vm1340_vm4, %v2502_v53  ;;  %2429 = vadd.xlane.f32.xlu0 %v2428_v9  ;;  %v2357_v29 = vmul.f32 1.442695, %v2297_v3  ;;  %v2446_v42 = vsel %vm1340_vm4, %v5686_v30, 0.0 }
 0x394   : > { %4130 = vrot.lane.b32.xlu2 %v5235_v45, %s4639_s9  ;;  %v2299_v45 = vsub.f32 %v5542_v41, %v2265_v24  ;;  %s4542_s9 = scalar_lea.hbm %s4541_s23, 64 }
 0x395   : > { %p4543_p1 = scmp.ne.s32.totalorder %s4541_s23, %s4542_s9  ;;  %p4548_p10 = scmp.lt.s32.totalorder %s4546_s30, %s4542_s9 }
 0x396   : > { %v2400_v54 = vpop.xlane.xlu0 %2399  ;;  %2432 = vadd.xlane.f32.xlu0 %v2431_v46  ;;  %v2361_v27 = vmul.f32 1.442695, %v2299_v45 }
 0x397   : > { %4228 = vrcp.f32 %v2400_v54  ;;  %p4544_p2 = pnand %p4543_p1, %p4798_p7  ;;  %p4549_p11 = por %p4548_p10, %p4547_p8 }
 0x398   : > { %4230 = vpow2.f32 %v2357_v29 }
 0x399   : > { %p4545_p4 = pneg %p4544_p2 }
 0x39b   : > { %p4550_p12 = pnand %p4549_p11, %p4545_p4 }
 0x39d   : > { %v4229_v14 = vpop.eup %4228 }
 0x39e   : > { %v2504_v17 = vmul.f32 %v4229_v14, %v5576_v19  ;;  %v2403_v25 = vpop.xlane.xlu0 %2402  ;;  %2447 = vadd.xlane.f32.xlu0 %v2446_v42  ;;  %v5695_v56 = vpop.eup %4230 }
 0x39f   : > { %4232 = vrcp.f32 %v2403_v25  ;;  %v2449_v24 = vsel %vm1340_vm4, %v5695_v56, 0.0 }
 0x3a0   : > { %3904 = vmatmul.msk.f32.vlgmr.msra.gmra.mxu2 %vm1340_vm4, %v2504_v17  ;;  %4234 = vpow2.f32 %v2351_v62 }
 0x3a1   : > { %4236 = vpow2.f32 %v2361_v27  ;;  %v2300_v27 = vsub.f32 %v5535_v52, %v5642_v13 }
 0x3a5   : > { %v4233_v23 = vpop.eup %4232 }
 0x3a6   : > { %v2505_v41 = vmul.f32 %v4233_v23, %v5584_v12  ;;  %v2415_v19 = vpop.xlane.xlu2 %2414  ;;  %2450 = vadd.xlane.f32.xlu0 %v2449_v24  ;;  %v5702_v20 = vpop.eup %4234  ;;  %v2292_v12 = vsub.f32 %v5522_v21, %v2244_v0 }
 0x3a7   : > { %4238 = vrcp.f32 %v2415_v19  ;;  %v5706_v28 = vpop.eup %4236  ;;  %v2440_v57 = vsel %vm1340_vm4, %v5702_v20, 0.0 }
 0x3a8   : > { %3905 = vmatmul.msk.f32.vlgmr.msra.gmra.mxu3 %vm1340_vm4, %v2505_v41  ;;  %4240 = vpow2.f32 %v2339_v33  ;;  %v2347_v48 = vmul.f32 1.442695, %v2292_v12  ;;  %v2455_v7 = vsel %vm1340_vm4, %v5706_v28, 0.0 }
 0x3a9   : > { %3003 = vmatpush.msra.mxu3 %v4108_v34  ;;  %4242 = vpow2.f32 %v2353_v37 }
 0x3aa   : > { %4244 = vpow2.f32 %v2347_v48 }
 0x3ac   : > { %2441 = vadd.xlane.f32.xlu1 %v2440_v57 }
 0x3ad   : > { %v4239_v32 = vpop.eup %4238 }
 0x3ae   : > { %v2509_v40 = vmul.f32 %v4239_v32, %v5588_v4  ;;  %v5711_v10 = vpop.permute.xlu2 %4125  ;;  %2456 = vadd.xlane.f32.xlu0 %v2455_v7  ;;  %v5717_v21 = vpop.eup %4240 }
 0x3af   : > { %v4127_v11 = vunpack.i.l.bf16 %v5711_v10  ;;  %v2422_v4 = vsel %vm1340_vm4, %v5717_v21, 0.0  ;;  %v5723_v5 = vpop.eup %4242  ;;  %v4128_v52 = vunpack.i.h.bf16 %v5711_v10  ;;  %v5765_v7 = vpop.f32.mrf.mxu3 }
 0x3b0   : > { %3909 = vmatmul.msk.f32.vlgmr.msrb.gmra.mxu3 %vm1340_vm4, %v2509_v40  ;;  %v5725_v39 = vpop.eup %4244  ;;  %v2443_v53 = vsel %vm1340_vm4, %v5723_v5, 0.0 }
 0x3b1   : > { %3095 = vmatpush.msrb.mxu3 %v4127_v11  ;;  %v2434_v55 = vsel %vm1340_vm4, %v5725_v39, 0.0 }
 0x3b3   : > { %v2406_v59 = vpop.xlane.xlu1 %2405 }
 0x3b4   : > { %2423 = vadd.xlane.f32.xlu1 %v2422_v4  ;;  %4246 = vrcp.f32 %v2406_v59 }
 0x3b5   : > { %4248 = vpow2.f32 %v2359_v16 }
 0x3ba   : > { %v4247_v35 = vpop.eup %4246 }
 0x3bb   : > { %v2506_v60 = vmul.f32 %v4247_v35, %v5594_v26  ;;  %v2418_v49 = vpop.xlane.xlu0 %2417  ;;  %v5733_v31 = vpop.eup %4248 }
 0x3bc   : > { %2435 = vadd.xlane.f32.xlu1 %v2434_v55  ;;  %v2452_v9 = vsel %vm1340_vm4, %v5733_v31, 0.0 }
 0x3bd   : > { %2444 = vadd.xlane.f32.xlu2 %v2443_v53  ;;  %3906 = vmatmul.msk.f32.vlgmr.msrb.gmra.mxu0 %vm1340_vm4, %v2506_v60  ;;  %v5770_v53 = vpop.f32.mrf.mxu3 }
 0x3c3   : > { %v2427_v44 = vpop.xlane.xlu0 %2426  ;;  %v2409_v3 = vpop.xlane.xlu1 %2408 }
 0x3c4   : > { %4250 = vrcp.f32 %v2427_v44 }
 0x3c5   : > { %2453 = vadd.xlane.f32.xlu2 %v2452_v9  ;;  %4252 = vrcp.f32 %v2409_v3  ;;  %v2568_v3 = vpop.f32.mrf.mxu0 }
 0x3c6   : > { %4254 = vrcp.f32 %v2418_v49 }
 0x3ca   : > { %v4251_v54 = vpop.eup %4250 }
 0x3cb   : > { %v4253_v46 = vpop.eup %4252  ;;  %v2513_v29 = vmul.f32 %v4251_v54, %v5614_v8 }
 0x3cc   : > { %v2507_v26 = vmul.f32 %v4253_v46, %v5616_v63  ;;  %v4255_v18 = vpop.eup %4254 }
 0x3cd   : > { %3913 = vmatmul.msk.f32.vlgmr.msra.gmra.mxu3 %vm1340_vm4, %v2513_v29  ;;  %v2510_v8 = vmul.f32 %v4255_v18, %v5603_v1 }
 0x3ce   : > { %3907 = vmatmul.msk.f32.vlgmr.msrb.gmra.mxu1 %vm1340_vm4, %v2507_v26 }
 0x3d4   : > { %v2439_v14 = vpop.xlane.xlu1 %2438 }
 0x3d5   : > { %4256 = vrcp.f32 %v2439_v14  ;;  %4145 = vrot.lane.b32.xlu1 %v4144_v51, %s4641_s21  ;;  %v2660_v14 = vpop.f32.mrf.mxu0 }
 0x3d6   : > { %v4121_v45 = vpop.permute.xlu0 %4120 }
 0x3d7   : > { %v4123_v17 = vunpack.i.h.bf16 %v4121_v45  ;;  %v4122_v25 = vunpack.i.l.bf16 %v4121_v45 }
 0x3d9   : > { %2934 = vmatpush.msra.mxu0 %v4122_v25  ;;  %2957 = vmatpush.msra.mxu1 %v4123_v17 }
 0x3da   : > { %3910 = vmatmul.msk.f32.vlgmr.msra.gmra.mxu0 %vm1340_vm4, %v2510_v8 }
 0x3db   : > { %v4257_v63 = vpop.eup %4256 }
 0x3dc   : > { %v2517_v62 = vmul.f32 %v4257_v63, %v5631_v61  ;;  %v2363_v61 = vmul.f32 1.442695, %v2300_v27  ;;  %v3261_v27 = vld [vmem:[#allocation15] sm:$0xff] }
 0x3dd   : > { %4150 = vrot.lane.b32.xlu2 %v5217_v15, %s4641_s21 }
 0x3de   : > { %3917 = vmatmul.msk.f32.vlgmr.msrb.gmra.mxu3 %vm1340_vm4, %v2517_v62 }
 0x3e7   : > { %v2421_v38 = vpop.xlane.xlu2 %2420 }
 0x3e8   : > { %4258 = vrcp.f32 %v2421_v38 }
 0x3ec   : > { %v4136_v43 = vpop.permute.xlu1 %4135 }
 0x3ed   : > { %v4137_v1 = vunpack.i.l.bf16 %v4136_v43  ;;  %v4138_v13 = vunpack.i.h.bf16 %v4136_v43 }
 0x3ee   : > { %v4259_v42 = vpop.eup %4258 }
 0x3ef   : > { %v2511_v58 = vmul.f32 %v4259_v42, %v5648_v2  ;;  %v2412_v23 = vpop.xlane.xlu2 %2411  ;;  %3049 = vmatpush.msrb.mxu1 %v4137_v1 }
 0x3f0   : > { %4260 = vrcp.f32 %v2412_v23 }
 0x3f1   : > { %3911 = vmatmul.msk.f32.vlgmr.msra.gmra.mxu1 %vm1340_vm4, %v2511_v58  ;;  %4262 = vpow2.f32 %v2363_v61  ;;  %v2591_v58 = vpop.f32.mrf.mxu1  ;;  %v2614_v61 = vpop.f32.mrf.mxu2 }
 0x3f4   : > { %v4141_v41 = vpop.permute.xlu1 %4140 }
 0x3f5   : > { %v4142_v19 = vunpack.i.l.bf16 %v4141_v41  ;;  %v4143_v55 = vunpack.i.h.bf16 %v4141_v41 }
 0x3f6   : > { %v4261_v15 = vpop.eup %4260 }
 0x3f7   : > { %v2508_v34 = vmul.f32 %v4261_v15, %v5652_v22  ;;  %v4131_v33 = vpop.permute.xlu2 %4130  ;;  %3141 = vmatpush.msra.mxu1 %v4142_v19  ;;  %v5757_v2 = vpop.eup %4262  ;;  %v3264_v19 = vld [vmem:[#allocation15 + $0x18] sm:$0xff] }
 0x3f8   : > { %v4133_v24 = vunpack.i.h.bf16 %v4131_v33  ;;  %v4132_v0 = vunpack.i.l.bf16 %v4131_v33  ;;  %v2458_v6 = vsel %vm1340_vm4, %v5757_v2, 0.0 }
 0x3f9   : > { %3908 = vmatmul.msk.f32.vlgmr.msrb.gmra.mxu2 %vm1340_vm4, %v2508_v34  ;;  %v2706_v15 = vpop.f32.mrf.mxu2 }
 0x3fa   : > { %2980 = vmatpush.msra.mxu2 %v4133_v24  ;;  %3026 = vmatpush.msrb.mxu0 %v4132_v0 }
 0x3fc   : > { %3072 = vmatpush.msrb.mxu2 %v4138_v13  ;;  %3118 = vmatpush.msra.mxu0 %v4128_v52 }
 0x3ff   : > { %2459 = vadd.xlane.f32.xlu1 %v2458_v6 }
 0x400   : > { %v2729_v54 = vpop.f32.mrf.mxu3 }
 0x401   : > { %v2430_v22 = vpop.xlane.xlu0 %2429 }
 0x402   : > { %4264 = vrcp.f32 %v2430_v22 }
 0x408   : > { %v4265_v12 = vpop.eup %4264 }
 0x409   : > { %v2514_v57 = vmul.f32 %v4265_v12, %v5667_v50  ;;  %v2433_v32 = vpop.xlane.xlu0 %2432 }
 0x40a   : > { %4266 = vrcp.f32 %v2433_v32 }
 0x40b   : > { %3914 = vmatmul.msk.f32.vlgmr.msrb.gmra.mxu0 %vm1340_vm4, %v2514_v57  ;;  %v2752_v63 = vpop.f32.mrf.mxu0 }
 0x410   : > { %v4267_v37 = vpop.eup %4266 }
 0x411   : > { %v2515_v40 = vmul.f32 %v4267_v37, %v5676_v36  ;;  %v2448_v48 = vpop.xlane.xlu0 %2447 }
 0x413   : > { %3915 = vmatmul.msk.f32.vlgmr.msrb.gmra.mxu1 %vm1340_vm4, %v2515_v40 }
 0x419   : > { %v2451_v50 = vpop.xlane.xlu0 %2450 }
 0x41f   : > { %v2442_v10 = vpop.xlane.xlu1 %2441 }
 0x420   : > { %4268 = vrcp.f32 %v2442_v10 }
 0x421   : > { %v2457_v60 = vpop.xlane.xlu0 %2456 }
 0x423   : > { %v2798_v33 = vpop.f32.mrf.mxu2 }
 0x426   : > { %v4269_v11 = vpop.eup %4268 }
 0x427   : > { %v2518_v47 = vmul.f32 %v4269_v11, %v5702_v20  ;;  %v2424_v4 = vpop.xlane.xlu1 %2423 }
 0x428   : > { %4270 = vrcp.f32 %v2424_v4 }
 0x429   : > { %3918 = vmatmul.msk.f32.vlgmr.msra.gmra.mxu0 %vm1340_vm4, %v2518_v47 }
 0x42b   : > { %v2821_v17 = vpop.f32.mrf.mxu3 }
 0x42e   : > { %v4271_v59 = vpop.eup %4270 }
 0x42f   : > { %v2512_v16 = vmul.f32 %v4271_v59, %v5717_v21  ;;  %v2436_v35 = vpop.xlane.xlu1 %2435 }
 0x430   : > { %v2445_v36 = vpop.xlane.xlu2 %2444  ;;  %4272 = vrcp.f32 %v2436_v35 }
 0x431   : > { %4274 = vrcp.f32 %v2445_v36  ;;  %3912 = vmatmul.msk.f32.vlgmr.msra.gmra.mxu2 %vm1340_vm4, %v2512_v16 }
 0x432   : > { %3164 = vmatpush.msra.mxu2 %v4143_v55  ;;  %4276 = vrcp.f32 %v2448_v48  ;;  %v5824_v55 = vld [vmem:[%s5949_s11] ss:$0 sm:$0xff] }
 0x433   : > { %4278 = vrcp.f32 %v2457_v60  ;;  %v2913_v1 = vpop.f32.mrf.mxu3 }
 0x434   : > { %4280 = vrcp.f32 %v2451_v50 }
 0x436   : > { %v4273_v20 = vpop.eup %4272 }
 0x437   : > { %v4275_v49 = vpop.eup %4274  ;;  %v2516_v9 = vmul.f32 %v4273_v20, %v5725_v39 }
 0x438   : > { %v2454_v44 = vpop.xlane.xlu2 %2453  ;;  %v2519_v21 = vmul.f32 %v4275_v49, %v5723_v5  ;;  %v4277_v46 = vpop.eup %4276  ;;  %v3263_v5 = vld [vmem:[#allocation15 + $0x10] sm:$0xff] }
 0x439   : > { %3916 = vmatmul.msk.f32.vlgmr.msrb.gmra.mxu2 %vm1340_vm4, %v2516_v9  ;;  %v4279_v29 = vpop.eup %4278  ;;  %v2520_v26 = vmul.f32 %v4277_v46, %v5686_v30  ;;  %4282 = vrcp.f32 %v2454_v44 }
 0x43a   : > { %3919 = vmatmul.msk.f32.vlgmr.msra.gmra.mxu1 %vm1340_vm4, %v2519_v21  ;;  %v2523_v45 = vmul.f32 %v4279_v29, %v5706_v28  ;;  %v4281_v25 = vpop.eup %4280  ;;  %v3262_v28 = vld [vmem:[#allocation15 + $0x8] sm:$0xff]  ;;  %v2844_v23 = vpop.f32.mrf.mxu0 }
 0x43b   : > { %v2521_v43 = vmul.f32 %v4281_v25, %v5695_v56  ;;  %v2683_v56 = vpop.f32.mrf.mxu1 }
 0x43f   : > { %v4283_v8 = vpop.eup %4282 }
 0x440   : > { %v4151_v51 = vpop.permute.xlu2 %4150  ;;  %v2522_v42 = vmul.f32 %v4283_v8, %v5733_v31 }
 0x441   : > { %v4153_v18 = vunpack.i.h.bf16 %v4151_v51  ;;  %v4152_v39 = vunpack.i.l.bf16 %v4151_v51  ;;  %3920 = vmatmul.msk.f32.vlgmr.msra.gmra.mxu2 %vm1340_vm4, %v2520_v26 }
 0x443   : > { %3233 = vmatpush.msrb.mxu1 %v4152_v39  ;;  %3256 = vmatpush.msrb.mxu2 %v4153_v18  ;;  %v2775_v41 = vpop.f32.mrf.mxu1 }
 0x444   : > { %3923 = vmatmul.msk.f32.vlgmr.msrb.gmra.mxu1 %vm1340_vm4, %v2523_v45 }
 0x445   : > { %3434 = vmatpush.msra.mxu1 %v3263_v5  ;;  %3507 = vmatpush.msra.mxu2 %v3264_v19 }
 0x447   : > { %v4146_v30 = vpop.permute.xlu1 %4145 }
 0x448   : > { %v4148_v62 = vunpack.i.h.bf16 %v4146_v30  ;;  %v4147_v38 = vunpack.i.l.bf16 %v4146_v30 }
 0x44a   : > { %3187 = vmatpush.msra.mxu3 %v4147_v38  ;;  %3210 = vmatpush.msrb.mxu0 %v4148_v62 }
 0x44b   : > { %3921 = vmatmul.msk.f32.vlgmr.msra.gmra.mxu3 %vm1340_vm4, %v2521_v43  ;;  %3922 = vmatmul.msk.f32.vlgmr.msrb.gmra.mxu0 %vm1340_vm4, %v2522_v42  ;;  %v2867_v34 = vpop.f32.mrf.mxu1 }
 0x44c   : > { %3941 = vmatmul.msk.f32.vlgmr.msra.gmra.mxu1 %vm1340_vm4, %v2913_v1  ;;  %3304 = vmatpush.msrb.mxu3 %v3262_v28 }
 0x44d   : > { %3369 = vmatpush.msra.mxu0 %v3261_v27 }
 0x450   : > { %v3005_v6 = vpop.f32.mrf.mxu3 }
 0x453   : > { %3925 = vmatmul.msk.f32.vlgmr.msrb.gmra.mxu3 %vm1340_vm4, %v2729_v54  ;;  %3933 = vmatmul.msk.f32.vlgmr.msra.gmra.mxu0 %vm1340_vm4, %v5765_v7 }
 0x457   : > { %v2936_v31 = vpop.f32.mrf.mxu0 }
 0x458   : > { %3942 = vmatmul.msk.f32.gmra.mxu1 %vm1340_vm4, %v2936_v31 }
 0x45b   : > { %3926 = vmatmul.msk.f32.gmra.mxu3 %vm1340_vm4, %v2752_v63  ;;  %3934 = vmatmul.msk.f32.gmra.mxu0 %vm1340_vm4, %v2568_v3 }
 0x461   : > { %v3097_v22 = vpop.f32.mrf.mxu3 }
 0x463   : > { %3927 = vmatmul.msk.f32.gmra.mxu3 %vm1340_vm4, %v2775_v41  ;;  %3935 = vmatmul.msk.f32.gmra.mxu0 %vm1340_vm4, %v2591_v58 }
 0x46b   : > { %3928 = vmatmul.msk.f32.gmra.mxu3 %vm1340_vm4, %v2798_v33  ;;  %3936 = vmatmul.msk.f32.gmra.mxu0 %vm1340_vm4, %v2614_v61 }
 0x46e   : > { %v2959_v24 = vpop.f32.mrf.mxu1 }
 0x46f   : > { %3943 = vmatmul.msk.f32.gmra.mxu1 %vm1340_vm4, %v2959_v24 }
 0x472   : > { %v2460_v0 = vpop.xlane.xlu1 %2459 }
 0x473   : > { %4284 = vrcp.f32 %v2460_v0  ;;  %3929 = vmatmul.msk.f32.gmra.mxu3 %vm1340_vm4, %v2821_v17  ;;  %3937 = vmatmul.msk.f32.gmra.mxu0 %vm1340_vm4, %v5770_v53 }
 0x479   : > { %v4285_v52 = vpop.eup %4284 }
 0x47a   : > { %v2524_v13 = vmul.f32 %v4285_v52, %v5757_v2 }
 0x47b   : > { %3930 = vmatmul.msk.f32.gmra.mxu3 %vm1340_vm4, %v2844_v23  ;;  %3938 = vmatmul.msk.f32.gmra.mxu0 %vm1340_vm4, %v2660_v14 }
 0x47c   : > { %3924 = vmatmul.msk.f32.vlgmr.msrb.gmra.mxu2 %vm1340_vm4, %v2524_v13  ;;  %v2890_v12 = vpop.f32.mrf.mxu2 }
 0x483   : > { %3931 = vmatmul.msk.f32.gmra.mxu3 %vm1340_vm4, %v2867_v34  ;;  %3939 = vmatmul.msk.f32.gmra.mxu0 %vm1340_vm4, %v2683_v56 }
 0x484   : > { %3949 = vmatmul.msk.f32.vlgmr.msra.gmra.mxu2 %vm1340_vm4, %v3097_v22 }
 0x488   : > { %v3028_v2 = vpop.f32.mrf.mxu0 }
 0x48b   : > { %3932 = vmatmul.msk.f32.gmra.mxu3 %vm1340_vm4, %v2890_v12  ;;  %3940 = vmatmul.msk.f32.gmra.mxu0 %vm1340_vm4, %v2706_v15 }
 0x490   : > { %v3051_v32 = vpop.f32.mrf.mxu1 }
 0x4a6   : > { %v3120_v57 = vpop.f32.mrf.mxu0 }
 0x4a7   : > { %3950 = vmatmul.msk.f32.gmra.mxu2 %vm1340_vm4, %v3120_v57 }
 0x4b4   : > { %v2982_v37 = vpop.f32.mrf.mxu2 }
 0x4b5   : > { %3944 = vmatmul.msk.f32.gmra.mxu1 %vm1340_vm4, %v2982_v37 }
 0x4b7   : > { %v3143_v40 = vpop.f32.mrf.mxu1 }
 0x4b8   : > { %3951 = vmatmul.msk.f32.gmra.mxu2 %vm1340_vm4, %v3143_v40 }
 0x4bc   : > { %v3074_v10 = vpop.f32.mrf.mxu2 }
 0x4bd   : > { %3945 = vmatmul.msk.f32.gmra.mxu1 %vm1340_vm4, %v3005_v6 }
 0x4c1   : > { %v3235_v47 = vpop.f32.mrf.mxu1 }
 0x4c4   : > { %v3166_v48 = vpop.f32.mrf.mxu2 }
 0x4c5   : > { %3946 = vmatmul.msk.f32.gmra.mxu1 %vm1340_vm4, %v3028_v2  ;;  %3952 = vmatmul.msk.f32.gmra.mxu2 %vm1340_vm4, %v3166_v48 }
 0x4c8   : > { %v3212_v7 = vpop.f32.mrf.mxu0 }
 0x4c9   : > { %v3436_v35 = vpop.f32.mrf.mxu1 }
 0x4cd   : > { %3947 = vmatmul.msk.f32.gmra.mxu1 %vm1340_vm4, %v3051_v32 }
 0x4ce   : > { %v3189_v11 = vpop.f32.mrf.mxu3 }
 0x4cf   : > { %3953 = vmatmul.msk.f32.gmra.mxu2 %vm1340_vm4, %v3189_v11 }
 0x4d0   : > { %v3371_v59 = vpop.f32.mrf.mxu0 }
 0x4d5   : > { %3948 = vmatmul.msk.f32.gmra.mxu1 %vm1340_vm4, %v3074_v10  ;;  %v3439_v3 = vpop.f32.mrf.mxu1 }
 0x4d6   : > { %v3306_v4 = vpop.f32.mrf.mxu3 }
 0x4d7   : > { %3954 = vmatmul.msk.f32.gmra.mxu2 %vm1340_vm4, %v3212_v7  ;;  %v3372_v16 = vadd.f32 %v3371_v59, %v3306_v4 }
 0x4d8   : > { %v3374_v9 = vpop.f32.mrf.mxu0 }
 0x4d9   : > { %v3460_v36 = vadd.f32 %v3436_v35, %v3372_v16 }
 0x4de   : > { %v3309_v49 = vpop.f32.mrf.mxu3 }
 0x4df   : > { %3955 = vmatmul.msk.f32.gmra.mxu2 %vm1340_vm4, %v3235_v47  ;;  %v3375_v44 = vadd.f32 %v3374_v9, %v3309_v49 }
 0x4e0   : > { %v3377_v51 = vpop.f32.mrf.mxu0 }
 0x4e1   : > { %v3461_v21 = vadd.f32 %v3439_v3, %v3375_v44 }
 0x4e6   : > { %v3312_v26 = vpop.f32.mrf.mxu3 }
 0x4e7   : > { %v3378_v18 = vadd.f32 %v3377_v51, %v3312_v26 }
 0x4e8   : > { %v3380_v8 = vpop.f32.mrf.mxu0 }
 0x4ec   : > { %v3442_v14 = vpop.f32.mrf.mxu1 }
 0x4ed   : > { %v3462_v39 = vadd.f32 %v3442_v14, %v3378_v18 }
 0x4ee   : > { %v3315_v5 = vpop.f32.mrf.mxu3 }
 0x4ef   : > { %v3381_v63 = vadd.f32 %v3380_v8, %v3315_v5 }
 0x4f0   : > { %v3383_v28 = vpop.f32.mrf.mxu0 }
 0x4f6   : > { %v3318_v38 = vpop.f32.mrf.mxu3 }
 0x4f7   : > { %v3384_v58 = vadd.f32 %v3383_v28, %v3318_v38 }
 0x4f8   : > { %v3386_v41 = vpop.f32.mrf.mxu0 }
 0x4fe   : > { %v3321_v56 = vpop.f32.mrf.mxu3 }
 0x4ff   : > { %v3258_v50 = vpop.f32.mrf.mxu2  ;;  %v3387_v34 = vadd.f32 %v3386_v41, %v3321_v56 }
 0x500   : > { %3956 = vmatmul.msk.f32.gmra.mxu2 %vm1340_vm4, %v3258_v50  ;;  %v3389_v6 = vpop.f32.mrf.mxu0 }
 0x506   : > { %v3324_v52 = vpop.f32.mrf.mxu3 }
 0x507   : > { %v3509_v53 = vpop.f32.mrf.mxu2  ;;  %v3390_v12 = vadd.f32 %v3389_v6, %v3324_v52 }
 0x508   : > { %v3533_v60 = vadd.f32 %v3509_v53, %v3460_v36  ;;  %v3392_v10 = vpop.f32.mrf.mxu0 }
 0x50a   : > { %v3545_v20 = vadd.f32 %v5824_v55, %v3533_v60 }
 0x50c   : > { %3553 = vst.msk [vmem:[%s5828_s25] sm:$0xff] %vm667_vm1, %v3545_v20 }
 0x50e   : > { %v3327_v40 = vpop.f32.mrf.mxu3 }
 0x50f   : > { %v3393_v11 = vadd.f32 %v3392_v10, %v3327_v40 }
 0x52a   : > { %v3512_v54 = vpop.f32.mrf.mxu2 }
 0x52b   : > { %v3534_v46 = vadd.f32 %v3512_v54, %v3461_v21 }
 0x52d   : > { %v3546_v29 = vadd.f32 %v5824_v55, %v3534_v46 }
 0x52f   : > { %3554 = vst.msk [vmem:[%s5828_s25 + $0x8] sm:$0xff] %vm667_vm1, %v3546_v29 }
 0x532   : > { %v3445_v30 = vpop.f32.mrf.mxu1 }
 0x533   : > { %v3463_v62 = vadd.f32 %v3445_v30, %v3381_v63 }
 0x53a   : > { %v3448_v27 = vpop.f32.mrf.mxu1 }
 0x53b   : > { %v3515_v45 = vpop.f32.mrf.mxu2  ;;  %v3464_v23 = vadd.f32 %v3448_v27, %v3384_v58 }
 0x53c   : > { %v3535_v17 = vadd.f32 %v3515_v45, %v3462_v39 }
 0x53e   : > { %v3547_v25 = vadd.f32 %v5824_v55, %v3535_v17 }
 0x540   : > { %3555 = vst.msk [vmem:[%s5828_s25 + $0x10] sm:$0xff] %vm667_vm1, %v3547_v25 }
 0x542   : > { %v3451_v15 = vpop.f32.mrf.mxu1 }
 0x543   : > { %v3465_v33 = vadd.f32 %v3451_v15, %v3387_v34 }
 0x548   : > { %v3518_v43 = vpop.f32.mrf.mxu2 }
 0x549   : > { %v3536_v42 = vadd.f32 %v3518_v43, %v3463_v62 }
 0x54a   : > { %v3454_v22 = vpop.f32.mrf.mxu1 }
 0x54b   : > { %v3548_v1 = vadd.f32 %v5824_v55, %v3536_v42  ;;  %v3466_v2 = vadd.f32 %v3454_v22, %v3390_v12 }
 0x54d   : > { %3556 = vst.msk [vmem:[%s5828_s25 + $0x18] sm:$0xff] %vm667_vm1, %v3548_v1 }
 0x552   : > { %v3521_v31 = vpop.f32.mrf.mxu2  ;;  %v3457_v48 = vpop.f32.mrf.mxu1 }
 0x553   : > { %v3537_v61 = vadd.f32 %v3521_v31, %v3464_v23  ;;  %v3467_v7 = vadd.f32 %v3457_v48, %v3393_v11 }
 0x555   : > { %v3549_v19 = vadd.f32 %v5824_v55, %v3537_v61 }
 0x557   : > { %3557 = vst.msk [vmem:[%s5828_s25 + $0x20] sm:$0xff] %vm667_vm1, %v3549_v19 }
 0x55a   : > { %v3524_v24 = vpop.f32.mrf.mxu2 }
 0x55b   : > { %v3538_v0 = vadd.f32 %v3524_v24, %v3465_v33 }
 0x55d   : > { %v3550_v13 = vadd.f32 %v5824_v55, %v3538_v0 }
 0x55f   : > { %3558 = vst.msk [vmem:[%s5828_s25 + $0x28] sm:$0xff] %vm667_vm1, %v3550_v13 }
 0x562   : > { %v3527_v57 = vpop.f32.mrf.mxu2 }
 0x563   : > { %v3539_v32 = vadd.f32 %v3527_v57, %v3466_v2 }
 0x565   : > { %v3551_v37 = vadd.f32 %v5824_v55, %v3539_v32 }
 0x567   : > { %3559 = vst.msk [vmem:[%s5828_s25 + $0x30] sm:$0xff] %vm667_vm1, %v3551_v37 }
 0x583   : > { %v3530_v47 = vpop.f32.mrf.mxu2 }
 0x584   : > { %v3540_v4 = vadd.f32 %v3530_v47, %v3467_v7 }
 0x586   : > { %v3552_v50 = vadd.f32 %v5824_v55, %v3540_v4 }
 0x588   : > { %3560 = vst.msk [vmem:[%s5828_s25 + $0x38] sm:$0xff] %vm667_vm1, %v3552_v50 }
 0x589   : > { %4553 = shalt.err (!%p4550_p12)
}
 0x58a   : > { %s4642_s10 = smov 128   ;;  %s4643_s20 = smov 8  }
 0x58b   : > { %3990 = dma.vmem_to_hbm [thread:$0]  (%p4798_p7), %s3577_s27, 1024, %s3579_s29, %s3562_s12, %s4642_s10, %s4642_s10, %s4643_s20  }
 0x58c PF: > { %s5953_s4 = sld [smem:[#allocation25_spill]]  ;;  %p5955_p13 = scmp.ge.s32.totalorder %s4628_s26, 2 }
 0x58e   : > { %p4019_p0 = pnand %p5955_p13, %p4754_p6 }
 0x590   : > { %p4020_p3 = pneg %p4019_p0 }
 0x592   : > { %s3593_s6 = sand.u32 1, %s5953_s4  }
 0x593   : > { %s3594_s11 = scalar_lea.sflag [#allocation5], %s3593_s6 }
 0x594   : > { %4603 = dma.done.wait (%p4020_p3), %s3594_s11, 1024  }
 0x595   : > { %4605 = vsyncadd (%p4020_p3), %s3594_s11, 4294966272  ;;  %s36_s26 = sadd.s32 1, %s4628_s26   ;;  %s5956_s25 = sld [smem:[#allocation26_spill]] }
 0x596   : > { %p33_p5 = scmp.ge.s32.totalorder %s36_s26, 4   ;;  %s5957_s23 = sld [smem:[#allocation32_spill]] }
 0x597   : > { %s5958_s24 = sld [smem:[#allocation28_spill]]  ;;  %s5960_s21 = smov %s4612_s22 }
 0x598   : > { %s5959_s16 = sld [smem:[#allocation30_spill]] }
 0x59a   :  { %35 = sbr.rel (!%p33_p5) target bundleno = 21 (0x15), region = 166 }
 0x59b   : > { %s5961_s22 = smov %s5956_s25 }
 0x59e   : > { %s5962_s25 = smov %s5959_s16 }
 0x59f   :  { %3600 = vsyncpa [#allocation4], 1 }
 0x5a0   :  { %3602 = vsyncpa [#allocation4 + $0x1], 1 }
 0x5a1   :  { %3603 = vsyncpa [#allocation7], 1 }
 0x5a2   :  { %3605 = vsyncpa [#allocation7 + $0x1], 1 }
 0x5a3   :  { %3606 = vsyncpa [#allocation10], 1 }
 0x5a4   :  { %3608 = vsyncpa [#allocation10 + $0x1], 1 }
 0x5a5   :  { %3609 = vsyncpa [#allocation13], 1 }
 0x5a6   :  { %3610 = vsyncpa [#allocation16], 1 }
 0x5a7   :  { %3611 = vsyncpa [#allocation5], 1 }
 0x5a8   :  { %3613 = vsyncpa [#allocation5 + $0x1], 1 }

</bundles_post_ra>
